<compile_context>
chip_gen: v6e
topology: v6e:2x2x1
jax: 0.10.0
libtpu: 0.0.40
codegen_flags: <defaults>
</compile_context>

<pallas_src>
import functools
import math

import jax
import jax.numpy as jnp
from jax import lax
from jax.experimental import pallas as pl
from jax.experimental.pallas import tpu as pltpu


def _layernorm(x, gamma, beta, eps=1e-5):
    mu = jnp.mean(x, axis=-1, keepdims=True)
    var = jnp.mean((x - mu) ** 2, axis=-1, keepdims=True)
    return (x - mu) * lax.rsqrt(var + eps) * gamma + beta


def _erf(x):
    # Abramowitz & Stegun 7.1.26 (|err| < 1.5e-7) — only exp/mul/add/where,
    # guaranteed to lower on Mosaic.  Matches exact-erf GELU to f32 precision.
    p = 0.3275911
    a1, a2, a3, a4, a5 = (0.254829592, -0.284496736, 1.421413741,
                          -1.453152027, 1.061405429)
    ax = jnp.abs(x)
    t = 1.0 / (1.0 + p * ax)
    poly = ((((a5 * t + a4) * t + a3) * t + a2) * t + a1) * t
    y = 1.0 - poly * jnp.exp(-ax * ax)
    return jnp.where(x >= 0, y, -y)


def _gelu(x):
    # nn.GELU default (approximate='none'): 0.5*x*(1+erf(x/sqrt(2))).
    # The reference module stores `act=nn.GELU` (the class); intent is a GELU
    # activation, which is what we implement.
    return 0.5 * x * (1.0 + _erf(x * (1.0 / math.sqrt(2.0))))


def block_kernel(x_ref,
                 ln1_g_ref, ln1_b_ref,
                 attn_w_ref, attn_b_ref,
                 proj_w_ref, proj_b_ref,
                 ln2_g_ref, ln2_b_ref,
                 fc_w_ref, fc_b_ref,
                 fc2_w_ref, fc2_b_ref,
                 out_ref,
                 *, n_head, seq_len, matmul_dtype):
    x = x_ref[...]                               # (M, C): Bt sequences of T rows
    M, C = x.shape
    T = seq_len
    Bt = M // T
    nh = n_head
    hs = C // nh
    G = Bt * nh
    scale = 1.0 / math.sqrt(hs)

    mm = lambda a: a.astype(matmul_dtype)        # MXU operand dtype (f32 or bf16)

    # ---------------- attention branch: x + c_proj(softmax(qk^T/sqrt(hs)) v) --
    h = _layernorm(x, ln1_g_ref[0], ln1_b_ref[0])
    qkv = jnp.dot(mm(h), attn_w_ref[...], preferred_element_type=jnp.float32)
    qkv = qkv + attn_b_ref[0]                    # (M, 3C), f32
    q = qkv[:, 0 * C:1 * C] * scale              # fold 1/sqrt(hs) into q
    k = qkv[:, 1 * C:2 * C]
    v = qkv[:, 2 * C:3 * C]

    def to_heads(z):                             # (M, C) -> (Bt*nh, T, hs)
        return jnp.stack([z[b * T:(b + 1) * T, hd * hs:(hd + 1) * hs]
                          for b in range(Bt) for hd in range(nh)], axis=0)

    qh, kh, vh = to_heads(q), to_heads(k), to_heads(v)

    # scores for all (batch, head) pairs in one batched contraction
    att = jnp.einsum('gqd,gkd->gqk', mm(qh), mm(kh),
                     preferred_element_type=jnp.float32)        # (G, T, T)

    # additive causal bias (robust: no inf arithmetic), built once
    row = lax.broadcasted_iota(jnp.int32, (T, T), 0)
    col = lax.broadcasted_iota(jnp.int32, (T, T), 1)
    neg = jnp.where(col <= row, 0.0, -1e9).astype(jnp.float32)  # (T, T)
    att = att + neg[None, :, :]

    # softmax over keys (legacy F.softmax default for 4-D => last dim)
    att = att - jnp.max(att, axis=-1, keepdims=True)
    p = jnp.exp(att)
    denom = jnp.sum(p, axis=-1, keepdims=True)
    r = pl.reciprocal(denom, approx=True)        # EUP seed ...
    r = r * (2.0 - denom * r)                    # ... + one Newton step (f32 acc.)
    p = p * r
    # attn_drop: identity at inference

    y = jnp.einsum('gqk,gkd->gqd', mm(p), mm(vh),
                   preferred_element_type=jnp.float32)          # (G, T, hs)

    # (Bt*nh, T, hs) -> (M, C)
    rows = [jnp.concatenate([y[b * nh + hd] for hd in range(nh)], axis=-1)
            for b in range(Bt)]                                  # Bt x (T, C)
    y_cat = rows[0] if Bt == 1 else jnp.concatenate(rows, axis=0)

    y_proj = jnp.dot(mm(y_cat), proj_w_ref[...],
                     preferred_element_type=jnp.float32)
    # resid_drop: identity at inference
    x = x + y_proj + proj_b_ref[0]

    # ---------------- MLP branch: x + c_proj(gelu(c_fc(ln2(x)))) --------------
    h2 = _layernorm(x, ln2_g_ref[0], ln2_b_ref[0])
    u = jnp.dot(mm(h2), fc_w_ref[...], preferred_element_type=jnp.float32)
    u = _gelu(u + fc_b_ref[0])
    m = jnp.dot(mm(u), fc2_w_ref[...], preferred_element_type=jnp.float32)
    # mlp drop: identity at inference
    out_ref[...] = (x + m + fc2_b_ref[0]).astype(out_ref.dtype)


def block_forward(x, params, n_head, *, batch_block=None,
                  matmul_dtype=jnp.float32):
    B, T, C = x.shape
    if batch_block is None:
        # >= 2 grid steps when possible so both v7x TensorCores are used;
        # fold the rest of the batch into the GEMM M dimension.
        batch_block = B // 2 if (B >= 2 and B % 2 == 0) else B
    assert B % batch_block == 0
    nb = B // batch_block
    M = batch_block * T

    (ln1_g, ln1_b, attn_w, attn_b, proj_w, proj_b,
     ln2_g, ln2_b, fc_w, fc_b, fc2_w, fc2_b) = params
    # Pre-cast the big GEMM weights (bf16 halves their HBM->VMEM traffic and is
    # MXU-native on v5e/v6e/v7x); LN params and biases stay f32.
    attn_w = attn_w.astype(matmul_dtype)
    proj_w = proj_w.astype(matmul_dtype)
    fc_w = fc_w.astype(matmul_dtype)
    fc2_w = fc2_w.astype(matmul_dtype)

    # Batch folded into the row (M) dimension; lane dim is C.  (For realistic
    # C >= 128 every load/store is already lane-dense; at C=32 the stores are
    # masked — packing rows into 128-lane slabs would need an in-kernel
    # lane-splitting reshape, deliberately avoided for lowering robustness.)
    x2 = x.reshape(B * T, C)

    kernel = functools.partial(block_kernel, n_head=n_head, seq_len=T,
                               matmul_dtype=matmul_dtype)

    def full(shape):
        # Constant index map: block is fetched once and stays VMEM-resident
        # across grid steps (Pallas skips re-copies when the block index is
        # unchanged).
        return pl.BlockSpec(shape, lambda i: (0,) * len(shape))

    in_specs = [
        pl.BlockSpec((M, C), lambda i: (i, 0)),         # x rows for this block
        full((1, C)), full((1, C)),                     # ln1 gamma/beta
        full((C, 3 * C)), full((1, 3 * C)),             # c_attn W, b
        full((C, C)), full((1, C)),                     # attn c_proj W, b
        full((1, C)), full((1, C)),                     # ln2 gamma/beta
        full((C, 4 * C)), full((1, 4 * C)),             # mlp c_fc W, b
        full((4 * C, C)), full((1, C)),                 # mlp c_proj W, b
    ]
    out = pl.pallas_call(
        kernel,
        out_shape=jax.ShapeDtypeStruct((B * T, C), x.dtype),
        grid=(nb,),
        in_specs=in_specs,
        out_specs=pl.BlockSpec((M, C), lambda i: (i, 0)),
        compiler_params=pltpu.CompilerParams(
            dimension_semantics=("parallel",),
            vmem_limit_bytes=32 * 1024 * 1024),
    )(x2, ln1_g, ln1_b, attn_w, attn_b, proj_w, proj_b,
      ln2_g, ln2_b, fc_w, fc_b, fc2_w, fc2_b)
    return out.reshape(B, T, C)


def block_ref(x, params, n_head):
    """Pure-JAX reference mirroring the PyTorch forward (eval mode)."""
    (ln1_g, ln1_b, attn_w, attn_b, proj_w, proj_b,
     ln2_g, ln2_b, fc_w, fc_b, fc2_w, fc2_b) = params

    def ln(z, g, bta):
        mu = jnp.mean(z, axis=-1, keepdims=True)
        var = jnp.mean((z - mu) ** 2, axis=-1, keepdims=True)
        return (z - mu) / jnp.sqrt(var + 1e-5) * g + bta

    B, T, C = x.shape
    hs = C // n_head
    h = ln(x, ln1_g[0], ln1_b[0])
    qkv = h @ attn_w + attn_b[0]
    q, k, v = jnp.split(qkv, 3, axis=-1)
    q = q.reshape(B, T, n_head, hs).transpose(0, 2, 1, 3)
    k = k.reshape(B, T, n_head, hs).transpose(0, 2, 1, 3)
    v = v.reshape(B, T, n_head, hs).transpose(0, 2, 1, 3)
    att = (q @ jnp.swapaxes(k, -1, -2)) / math.sqrt(hs)
    mask = jnp.tril(jnp.ones((T, T), bool))
    att = jnp.where(mask, att, -jnp.inf)
    att = jax.nn.softmax(att, axis=-1)
    y = (att @ v).transpose(0, 2, 1, 3).reshape(B, T, C)
    y = y @ proj_w + proj_b[0]
    x = x + y
    h2 = ln(x, ln2_g[0], ln2_b[0])
    u = jax.nn.gelu(h2 @ fc_w + fc_b[0], approximate=False)
    return x + u @ fc2_w + fc2_b[0]


if __name__ == "__main__":
    # config: n_dim=32, n_head=4, max_len=8 (T must equal max_len), pdrop -> 0
    # B=4 exercises both batch-folding (Bt=2 rows per step) and a 2-step grid.
    B, T, C, n_head = 4, 8, 32, 4
    key = jax.random.PRNGKey(0)
    keys = jax.random.split(key, 8)
    x = jax.random.normal(keys[0], (B, T, C), jnp.float32)

    params = (
        jnp.ones((1, C), jnp.float32),                                   # ln1 w
        jnp.zeros((1, C), jnp.float32),                                  # ln1 b
        0.05 * jax.random.normal(keys[1], (C, 3 * C), jnp.float32),      # c_attn W
        0.05 * jax.random.normal(keys[2], (1, 3 * C), jnp.float32),      # c_attn b
        0.05 * jax.random.normal(keys[3], (C, C), jnp.float32),          # attn c_proj W
        0.05 * jax.random.normal(keys[4], (1, C), jnp.float32),          # attn c_proj b
        jnp.ones((1, C), jnp.float32),                                   # ln2 w
        jnp.zeros((1, C), jnp.float32),                                  # ln2 b
        0.05 * jax.random.normal(keys[5], (C, 4 * C), jnp.float32),      # c_fc W
        0.05 * jax.random.normal(keys[6], (1, 4 * C), jnp.float32),      # c_fc b
        0.05 * jax.random.normal(keys[7], (4 * C, C), jnp.float32),      # mlp c_proj W
        jnp.zeros((1, C), jnp.float32),                                  # mlp c_proj b
    )

    ref = block_ref(x, params, n_head)

    # f32-operand path (exact semantics of the f32 PyTorch module)
    out = jax.block_until_ready(block_forward(x, params, n_head))
    assert out.shape == (B, T, C) and out.dtype == jnp.float32
    err = float(jnp.max(jnp.abs(out - ref)))
    assert jnp.allclose(out, ref, atol=1e-3, rtol=1e-3), f"f32 max abs err {err}"

    # bf16-operand MXU path (v5e/v6e/v7x MXU-native; accumulation stays f32)
    out_bf = jax.block_until_ready(
        block_forward(x, params, n_head, matmul_dtype=jnp.bfloat16))
    err_bf = float(jnp.max(jnp.abs(out_bf - ref)))
    assert jnp.allclose(out_bf, ref, atol=5e-2, rtol=5e-2), \
        f"bf16 max abs err {err_bf}"

    print("KERNEL_OK")
</pallas_src>

<mosaic_0001>
module attributes {stable_mosaic.version = 11 : i64} {
  func.func @block_kernel(%arg0: i32, %arg1: memref<16x32xf32, #tpu.memory_space<vmem>>, %arg2: memref<1x32xf32, #tpu.memory_space<vmem>>, %arg3: memref<1x32xf32, #tpu.memory_space<vmem>>, %arg4: memref<32x96xf32, #tpu.memory_space<vmem>>, %arg5: memref<1x96xf32, #tpu.memory_space<vmem>>, %arg6: memref<32x32xf32, #tpu.memory_space<vmem>>, %arg7: memref<1x32xf32, #tpu.memory_space<vmem>>, %arg8: memref<1x32xf32, #tpu.memory_space<vmem>>, %arg9: memref<1x32xf32, #tpu.memory_space<vmem>>, %arg10: memref<32x128xf32, #tpu.memory_space<vmem>>, %arg11: memref<1x128xf32, #tpu.memory_space<vmem>>, %arg12: memref<128x32xf32, #tpu.memory_space<vmem>>, %arg13: memref<1x32xf32, #tpu.memory_space<vmem>>, %arg14: memref<16x32xf32, #tpu.memory_space<vmem>>) attributes {dimension_semantics = [#tpu.dimension_semantics<parallel>], iteration_bounds = array<i64: 2>, scalar_prefetch = 0 : i64, scratch_operands = 0 : i64, tpu.core_type = #tpu.core_type<tc>, window_params = [{transform_indices = @transform_0, window_bounds = array<i64: 16, 32>}, {pipeline_mode = #tpu.pipeline_mode<synchronous>, transform_indices = @transform_1, window_bounds = array<i64: 1, 32>}, {pipeline_mode = #tpu.pipeline_mode<synchronous>, transform_indices = @transform_2, window_bounds = array<i64: 1, 32>}, {pipeline_mode = #tpu.pipeline_mode<synchronous>, transform_indices = @transform_3, window_bounds = array<i64: 32, 96>}, {pipeline_mode = #tpu.pipeline_mode<synchronous>, transform_indices = @transform_4, window_bounds = array<i64: 1, 96>}, {pipeline_mode = #tpu.pipeline_mode<synchronous>, transform_indices = @transform_5, window_bounds = array<i64: 32, 32>}, {pipeline_mode = #tpu.pipeline_mode<synchronous>, transform_indices = @transform_6, window_bounds = array<i64: 1, 32>}, {pipeline_mode = #tpu.pipeline_mode<synchronous>, transform_indices = @transform_7, window_bounds = array<i64: 1, 32>}, {pipeline_mode = #tpu.pipeline_mode<synchronous>, transform_indices = @transform_8, window_bounds = array<i64: 1, 32>}, {pipeline_mode = #tpu.pipeline_mode<synchronous>, transform_indices = @transform_9, window_bounds = array<i64: 32, 128>}, {pipeline_mode = #tpu.pipeline_mode<synchronous>, transform_indices = @transform_10, window_bounds = array<i64: 1, 128>}, {pipeline_mode = #tpu.pipeline_mode<synchronous>, transform_indices = @transform_11, window_bounds = array<i64: 128, 32>}, {pipeline_mode = #tpu.pipeline_mode<synchronous>, transform_indices = @transform_12, window_bounds = array<i64: 1, 32>}, {transform_indices = @transform_13, window_bounds = array<i64: 16, 32>}]} {
    %c0 = arith.constant 0 : index
    %c0_0 = arith.constant 0 : index
    %0 = vector.load %arg1[%c0, %c0_0] : memref<16x32xf32, #tpu.memory_space<vmem>>, vector<16x32xf32>
    %c0_1 = arith.constant 0 : index
    %c0_2 = arith.constant 0 : index
    %1 = vector.load %arg2[%c0_1, %c0_2] : memref<1x32xf32, #tpu.memory_space<vmem>>, vector<1x32xf32>
    %2 = vector.shape_cast %1 : vector<1x32xf32> to vector<32xf32>
    %c0_3 = arith.constant 0 : index
    %c0_4 = arith.constant 0 : index
    %3 = vector.load %arg3[%c0_3, %c0_4] : memref<1x32xf32, #tpu.memory_space<vmem>>, vector<1x32xf32>
    %4 = vector.shape_cast %3 : vector<1x32xf32> to vector<32xf32>
    %cst = arith.constant dense<0.000000e+00> : vector<16xf32>
    %5 = vector.multi_reduction <add>, %0, %cst [1] : vector<16x32xf32> to vector<16xf32>
    %6 = vector.shape_cast %5 : vector<16xf32> to vector<16x1xf32>
    %cst_5 = arith.constant 3.200000e+01 : f32
    %7 = vector.broadcast %cst_5 : f32 to vector<16x1xf32>
    %8 = arith.divf %6, %7 : vector<16x1xf32>
    %9 = vector.broadcast %8 : vector<16x1xf32> to vector<16x32xf32>
    %10 = arith.subf %0, %9 : vector<16x32xf32>
    %11 = arith.mulf %10, %10 : vector<16x32xf32>
    %cst_6 = arith.constant dense<0.000000e+00> : vector<16xf32>
    %12 = vector.multi_reduction <add>, %11, %cst_6 [1] : vector<16x32xf32> to vector<16xf32>
    %13 = vector.shape_cast %12 : vector<16xf32> to vector<16x1xf32>
    %cst_7 = arith.constant 3.200000e+01 : f32
    %14 = vector.broadcast %cst_7 : f32 to vector<16x1xf32>
    %15 = arith.divf %13, %14 : vector<16x1xf32>
    %16 = vector.broadcast %8 : vector<16x1xf32> to vector<16x32xf32>
    %17 = arith.subf %0, %16 : vector<16x32xf32>
    %cst_8 = arith.constant 9.99999974E-6 : f32
    %18 = vector.broadcast %cst_8 : f32 to vector<16x1xf32>
    %19 = arith.addf %15, %18 : vector<16x1xf32>
    %20 = math.rsqrt %19 : vector<16x1xf32>
    %21 = vector.broadcast %20 : vector<16x1xf32> to vector<16x32xf32>
    %22 = arith.mulf %17, %21 : vector<16x32xf32>
    %23 = vector.shape_cast %2 : vector<32xf32> to vector<1x32xf32>
    %24 = vector.broadcast %23 : vector<1x32xf32> to vector<16x32xf32>
    %25 = arith.mulf %22, %24 : vector<16x32xf32>
    %26 = vector.shape_cast %4 : vector<32xf32> to vector<1x32xf32>
    %27 = vector.broadcast %26 : vector<1x32xf32> to vector<16x32xf32>
    %28 = arith.addf %25, %27 : vector<16x32xf32>
    %c0_9 = arith.constant 0 : index
    %c0_10 = arith.constant 0 : index
    %29 = vector.load %arg4[%c0_9, %c0_10] : memref<32x96xf32, #tpu.memory_space<vmem>>, vector<32x96xf32>
    %cst_11 = arith.constant dense<0.000000e+00> : vector<16x96xf32>
    %30 = tpu.matmul %28, %29, %cst_11 {dimension_numbers = #tpu.dot_dimension_numbers<[1], [0], [0], [1], [0, 0, 1, 1], [], []>} : vector<16x32xf32>, vector<32x96xf32>, vector<16x96xf32> -> vector<16x96xf32>
    %c0_12 = arith.constant 0 : index
    %c0_13 = arith.constant 0 : index
    %31 = vector.load %arg5[%c0_12, %c0_13] : memref<1x96xf32, #tpu.memory_space<vmem>>, vector<1x96xf32>
    %32 = vector.shape_cast %31 : vector<1x96xf32> to vector<96xf32>
    %33 = vector.shape_cast %32 : vector<96xf32> to vector<1x96xf32>
    %34 = vector.broadcast %33 : vector<1x96xf32> to vector<16x96xf32>
    %35 = arith.addf %30, %34 : vector<16x96xf32>
    %36 = vector.extract_strided_slice %35 {offsets = [0, 0], sizes = [16, 32], strides = [1, 1]} : vector<16x96xf32> to vector<16x32xf32>
    %cst_14 = arith.constant 0.353553385 : f32
    %37 = vector.broadcast %cst_14 : f32 to vector<16x32xf32>
    %38 = arith.mulf %36, %37 : vector<16x32xf32>
    %39 = vector.extract_strided_slice %35 {offsets = [0, 32], sizes = [16, 32], strides = [1, 1]} : vector<16x96xf32> to vector<16x32xf32>
    %40 = vector.extract_strided_slice %35 {offsets = [0, 64], sizes = [16, 32], strides = [1, 1]} : vector<16x96xf32> to vector<16x32xf32>
    %41 = vector.extract_strided_slice %38 {offsets = [0, 0], sizes = [8, 8], strides = [1, 1]} : vector<16x32xf32> to vector<8x8xf32>
    %42 = vector.extract_strided_slice %38 {offsets = [0, 8], sizes = [8, 8], strides = [1, 1]} : vector<16x32xf32> to vector<8x8xf32>
    %43 = vector.extract_strided_slice %38 {offsets = [0, 16], sizes = [8, 8], strides = [1, 1]} : vector<16x32xf32> to vector<8x8xf32>
    %44 = vector.extract_strided_slice %38 {offsets = [0, 24], sizes = [8, 8], strides = [1, 1]} : vector<16x32xf32> to vector<8x8xf32>
    %45 = vector.extract_strided_slice %38 {offsets = [8, 0], sizes = [8, 8], strides = [1, 1]} : vector<16x32xf32> to vector<8x8xf32>
    %46 = vector.extract_strided_slice %38 {offsets = [8, 8], sizes = [8, 8], strides = [1, 1]} : vector<16x32xf32> to vector<8x8xf32>
    %47 = vector.extract_strided_slice %38 {offsets = [8, 16], sizes = [8, 8], strides = [1, 1]} : vector<16x32xf32> to vector<8x8xf32>
    %48 = vector.extract_strided_slice %38 {offsets = [8, 24], sizes = [8, 8], strides = [1, 1]} : vector<16x32xf32> to vector<8x8xf32>
    %49 = vector.shape_cast %41 : vector<8x8xf32> to vector<1x8x8xf32>
    %50 = vector.shape_cast %42 : vector<8x8xf32> to vector<1x8x8xf32>
    %51 = vector.shape_cast %43 : vector<8x8xf32> to vector<1x8x8xf32>
    %52 = vector.shape_cast %44 : vector<8x8xf32> to vector<1x8x8xf32>
    %53 = vector.shape_cast %45 : vector<8x8xf32> to vector<1x8x8xf32>
    %54 = vector.shape_cast %46 : vector<8x8xf32> to vector<1x8x8xf32>
    %55 = vector.shape_cast %47 : vector<8x8xf32> to vector<1x8x8xf32>
    %56 = vector.shape_cast %48 : vector<8x8xf32> to vector<1x8x8xf32>
    %57 = tpu.concatenate %49, %50, %51, %52, %53, %54, %55, %56 in 0 : vector<1x8x8xf32>, vector<1x8x8xf32>, vector<1x8x8xf32>, vector<1x8x8xf32>, vector<1x8x8xf32>, vector<1x8x8xf32>, vector<1x8x8xf32>, vector<1x8x8xf32> -> vector<8x8x8xf32>
    %58 = vector.extract_strided_slice %39 {offsets = [0, 0], sizes = [8, 8], strides = [1, 1]} : vector<16x32xf32> to vector<8x8xf32>
    %59 = vector.extract_strided_slice %39 {offsets = [0, 8], sizes = [8, 8], strides = [1, 1]} : vector<16x32xf32> to vector<8x8xf32>
    %60 = vector.extract_strided_slice %39 {offsets = [0, 16], sizes = [8, 8], strides = [1, 1]} : vector<16x32xf32> to vector<8x8xf32>
    %61 = vector.extract_strided_slice %39 {offsets = [0, 24], sizes = [8, 8], strides = [1, 1]} : vector<16x32xf32> to vector<8x8xf32>
    %62 = vector.extract_strided_slice %39 {offsets = [8, 0], sizes = [8, 8], strides = [1, 1]} : vector<16x32xf32> to vector<8x8xf32>
    %63 = vector.extract_strided_slice %39 {offsets = [8, 8], sizes = [8, 8], strides = [1, 1]} : vector<16x32xf32> to vector<8x8xf32>
    %64 = vector.extract_strided_slice %39 {offsets = [8, 16], sizes = [8, 8], strides = [1, 1]} : vector<16x32xf32> to vector<8x8xf32>
    %65 = vector.extract_strided_slice %39 {offsets = [8, 24], sizes = [8, 8], strides = [1, 1]} : vector<16x32xf32> to vector<8x8xf32>
    %66 = vector.shape_cast %58 : vector<8x8xf32> to vector<1x8x8xf32>
    %67 = vector.shape_cast %59 : vector<8x8xf32> to vector<1x8x8xf32>
    %68 = vector.shape_cast %60 : vector<8x8xf32> to vector<1x8x8xf32>
    %69 = vector.shape_cast %61 : vector<8x8xf32> to vector<1x8x8xf32>
    %70 = vector.shape_cast %62 : vector<8x8xf32> to vector<1x8x8xf32>
    %71 = vector.shape_cast %63 : vector<8x8xf32> to vector<1x8x8xf32>
    %72 = vector.shape_cast %64 : vector<8x8xf32> to vector<1x8x8xf32>
    %73 = vector.shape_cast %65 : vector<8x8xf32> to vector<1x8x8xf32>
    %74 = tpu.concatenate %66, %67, %68, %69, %70, %71, %72, %73 in 0 : vector<1x8x8xf32>, vector<1x8x8xf32>, vector<1x8x8xf32>, vector<1x8x8xf32>, vector<1x8x8xf32>, vector<1x8x8xf32>, vector<1x8x8xf32>, vector<1x8x8xf32> -> vector<8x8x8xf32>
    %75 = vector.extract_strided_slice %40 {offsets = [0, 0], sizes = [8, 8], strides = [1, 1]} : vector<16x32xf32> to vector<8x8xf32>
    %76 = vector.extract_strided_slice %40 {offsets = [0, 8], sizes = [8, 8], strides = [1, 1]} : vector<16x32xf32> to vector<8x8xf32>
    %77 = vector.extract_strided_slice %40 {offsets = [0, 16], sizes = [8, 8], strides = [1, 1]} : vector<16x32xf32> to vector<8x8xf32>
    %78 = vector.extract_strided_slice %40 {offsets = [0, 24], sizes = [8, 8], strides = [1, 1]} : vector<16x32xf32> to vector<8x8xf32>
    %79 = vector.extract_strided_slice %40 {offsets = [8, 0], sizes = [8, 8], strides = [1, 1]} : vector<16x32xf32> to vector<8x8xf32>
    %80 = vector.extract_strided_slice %40 {offsets = [8, 8], sizes = [8, 8], strides = [1, 1]} : vector<16x32xf32> to vector<8x8xf32>
    %81 = vector.extract_strided_slice %40 {offsets = [8, 16], sizes = [8, 8], strides = [1, 1]} : vector<16x32xf32> to vector<8x8xf32>
    %82 = vector.extract_strided_slice %40 {offsets = [8, 24], sizes = [8, 8], strides = [1, 1]} : vector<16x32xf32> to vector<8x8xf32>
    %83 = vector.shape_cast %75 : vector<8x8xf32> to vector<1x8x8xf32>
    %84 = vector.shape_cast %76 : vector<8x8xf32> to vector<1x8x8xf32>
    %85 = vector.shape_cast %77 : vector<8x8xf32> to vector<1x8x8xf32>
    %86 = vector.shape_cast %78 : vector<8x8xf32> to vector<1x8x8xf32>
    %87 = vector.shape_cast %79 : vector<8x8xf32> to vector<1x8x8xf32>
    %88 = vector.shape_cast %80 : vector<8x8xf32> to vector<1x8x8xf32>
    %89 = vector.shape_cast %81 : vector<8x8xf32> to vector<1x8x8xf32>
    %90 = vector.shape_cast %82 : vector<8x8xf32> to vector<1x8x8xf32>
    %91 = tpu.concatenate %83, %84, %85, %86, %87, %88, %89, %90 in 0 : vector<1x8x8xf32>, vector<1x8x8xf32>, vector<1x8x8xf32>, vector<1x8x8xf32>, vector<1x8x8xf32>, vector<1x8x8xf32>, vector<1x8x8xf32>, vector<1x8x8xf32> -> vector<8x8x8xf32>
    "tpu.trace_start"() <{level = 10 : i32, message = "gqd,gkd->gqk"}> : () -> ()
    %cst_15 = arith.constant dense<0.000000e+00> : vector<8x8x8xf32>
    %92 = tpu.matmul %57, %74, %cst_15 {dimension_numbers = #tpu.dot_dimension_numbers<[2], [2], [1], [1], [0, 0, 0, 1, 1, 1], [0], [0]>} : vector<8x8x8xf32>, vector<8x8x8xf32>, vector<8x8x8xf32> -> vector<8x8x8xf32>
    "tpu.trace_stop"() : () -> ()
    %93 = tpu.iota {dimensions = array<i32: 0>} : vector<8x8xi32>
    %94 = tpu.iota {dimensions = array<i32: 1>} : vector<8x8xi32>
    %95 = arith.cmpi sle, %94, %93 : vector<8x8xi32>
    %cst_16 = arith.constant 0.000000e+00 : f32
    %cst_17 = arith.constant -1.000000e+09 : f32
    %96 = vector.broadcast %cst_16 : f32 to vector<8x8xf32>
    %97 = vector.broadcast %cst_17 : f32 to vector<8x8xf32>
    %98 = arith.select %95, %96, %97 : vector<8x8xi1>, vector<8x8xf32>
    %99 = vector.shape_cast %98 : vector<8x8xf32> to vector<1x8x8xf32>
    %100 = vector.broadcast %99 : vector<1x8x8xf32> to vector<8x8x8xf32>
    %101 = arith.addf %92, %100 : vector<8x8x8xf32>
    %cst_18 = arith.constant dense<0xFF800000> : vector<8x8xf32>
    %102 = vector.multi_reduction <maximumf>, %101, %cst_18 [2] : vector<8x8x8xf32> to vector<8x8xf32>
    %103 = vector.shape_cast %102 : vector<8x8xf32> to vector<8x8x1xf32>
    %104 = vector.broadcast %103 : vector<8x8x1xf32> to vector<8x8x8xf32>
    %105 = arith.subf %101, %104 : vector<8x8x8xf32>
    %106 = math.exp %105 : vector<8x8x8xf32>
    %cst_19 = arith.constant dense<0.000000e+00> : vector<8x8xf32>
    %107 = vector.multi_reduction <add>, %106, %cst_19 [2] : vector<8x8x8xf32> to vector<8x8xf32>
    %108 = vector.shape_cast %107 : vector<8x8xf32> to vector<8x8x1xf32>
    %109 = tpu.reciprocal %108 {approx = true} : vector<8x8x1xf32> -> vector<8x8x1xf32>
    %110 = arith.mulf %108, %109 : vector<8x8x1xf32>
    %cst_20 = arith.constant 2.000000e+00 : f32
    %111 = vector.broadcast %cst_20 : f32 to vector<8x8x1xf32>
    %112 = arith.subf %111, %110 : vector<8x8x1xf32>
    %113 = arith.mulf %109, %112 : vector<8x8x1xf32>
    %114 = vector.broadcast %113 : vector<8x8x1xf32> to vector<8x8x8xf32>
    %115 = arith.mulf %106, %114 : vector<8x8x8xf32>
    "tpu.trace_start"() <{level = 10 : i32, message = "gqk,gkd->gqd"}> : () -> ()
    %cst_21 = arith.constant dense<0.000000e+00> : vector<8x8x8xf32>
    %116 = tpu.matmul %115, %91, %cst_21 {dimension_numbers = #tpu.dot_dimension_numbers<[2], [1], [1], [2], [0, 0, 0, 1, 1, 2], [0], [0]>} : vector<8x8x8xf32>, vector<8x8x8xf32>, vector<8x8x8xf32> -> vector<8x8x8xf32>
    "tpu.trace_stop"() : () -> ()
    %117 = vector.extract_strided_slice %116 {offsets = [0, 0, 0], sizes = [1, 8, 8], strides = [1, 1, 1]} : vector<8x8x8xf32> to vector<1x8x8xf32>
    %118 = vector.shape_cast %117 : vector<1x8x8xf32> to vector<8x8xf32>
    %119 = vector.extract_strided_slice %116 {offsets = [1, 0, 0], sizes = [1, 8, 8], strides = [1, 1, 1]} : vector<8x8x8xf32> to vector<1x8x8xf32>
    %120 = vector.shape_cast %119 : vector<1x8x8xf32> to vector<8x8xf32>
    %121 = vector.extract_strided_slice %116 {offsets = [2, 0, 0], sizes = [1, 8, 8], strides = [1, 1, 1]} : vector<8x8x8xf32> to vector<1x8x8xf32>
    %122 = vector.shape_cast %121 : vector<1x8x8xf32> to vector<8x8xf32>
    %123 = vector.extract_strided_slice %116 {offsets = [3, 0, 0], sizes = [1, 8, 8], strides = [1, 1, 1]} : vector<8x8x8xf32> to vector<1x8x8xf32>
    %124 = vector.shape_cast %123 : vector<1x8x8xf32> to vector<8x8xf32>
    %125 = tpu.concatenate %118, %120, %122, %124 in 1 : vector<8x8xf32>, vector<8x8xf32>, vector<8x8xf32>, vector<8x8xf32> -> vector<8x32xf32>
    %126 = vector.extract_strided_slice %116 {offsets = [4, 0, 0], sizes = [1, 8, 8], strides = [1, 1, 1]} : vector<8x8x8xf32> to vector<1x8x8xf32>
    %127 = vector.shape_cast %126 : vector<1x8x8xf32> to vector<8x8xf32>
    %128 = vector.extract_strided_slice %116 {offsets = [5, 0, 0], sizes = [1, 8, 8], strides = [1, 1, 1]} : vector<8x8x8xf32> to vector<1x8x8xf32>
    %129 = vector.shape_cast %128 : vector<1x8x8xf32> to vector<8x8xf32>
    %130 = vector.extract_strided_slice %116 {offsets = [6, 0, 0], sizes = [1, 8, 8], strides = [1, 1, 1]} : vector<8x8x8xf32> to vector<1x8x8xf32>
    %131 = vector.shape_cast %130 : vector<1x8x8xf32> to vector<8x8xf32>
    %132 = vector.extract_strided_slice %116 {offsets = [7, 0, 0], sizes = [1, 8, 8], strides = [1, 1, 1]} : vector<8x8x8xf32> to vector<1x8x8xf32>
    %133 = vector.shape_cast %132 : vector<1x8x8xf32> to vector<8x8xf32>
    %134 = tpu.concatenate %127, %129, %131, %133 in 1 : vector<8x8xf32>, vector<8x8xf32>, vector<8x8xf32>, vector<8x8xf32> -> vector<8x32xf32>
    %135 = tpu.concatenate %125, %134 in 0 : vector<8x32xf32>, vector<8x32xf32> -> vector<16x32xf32>
    %c0_22 = arith.constant 0 : index
    %c0_23 = arith.constant 0 : index
    %136 = vector.load %arg6[%c0_22, %c0_23] : memref<32x32xf32, #tpu.memory_space<vmem>>, vector<32x32xf32>
    %cst_24 = arith.constant dense<0.000000e+00> : vector<16x32xf32>
    %137 = tpu.matmul %135, %136, %cst_24 {dimension_numbers = #tpu.dot_dimension_numbers<[1], [0], [0], [1], [0, 0, 1, 1], [], []>} : vector<16x32xf32>, vector<32x32xf32>, vector<16x32xf32> -> vector<16x32xf32>
    %138 = arith.addf %0, %137 : vector<16x32xf32>
    %c0_25 = arith.constant 0 : index
    %c0_26 = arith.constant 0 : index
    %139 = vector.load %arg7[%c0_25, %c0_26] : memref<1x32xf32, #tpu.memory_space<vmem>>, vector<1x32xf32>
    %140 = vector.shape_cast %139 : vector<1x32xf32> to vector<32xf32>
    %141 = vector.shape_cast %140 : vector<32xf32> to vector<1x32xf32>
    %142 = vector.broadcast %141 : vector<1x32xf32> to vector<16x32xf32>
    %143 = arith.addf %138, %142 : vector<16x32xf32>
    %c0_27 = arith.constant 0 : index
    %c0_28 = arith.constant 0 : index
    %144 = vector.load %arg8[%c0_27, %c0_28] : memref<1x32xf32, #tpu.memory_space<vmem>>, vector<1x32xf32>
    %145 = vector.shape_cast %144 : vector<1x32xf32> to vector<32xf32>
    %c0_29 = arith.constant 0 : index
    %c0_30 = arith.constant 0 : index
    %146 = vector.load %arg9[%c0_29, %c0_30] : memref<1x32xf32, #tpu.memory_space<vmem>>, vector<1x32xf32>
    %147 = vector.shape_cast %146 : vector<1x32xf32> to vector<32xf32>
    %cst_31 = arith.constant dense<0.000000e+00> : vector<16xf32>
    %148 = vector.multi_reduction <add>, %143, %cst_31 [1] : vector<16x32xf32> to vector<16xf32>
    %149 = vector.shape_cast %148 : vector<16xf32> to vector<16x1xf32>
    %cst_32 = arith.constant 3.200000e+01 : f32
    %150 = vector.broadcast %cst_32 : f32 to vector<16x1xf32>
    %151 = arith.divf %149, %150 : vector<16x1xf32>
    %152 = vector.broadcast %151 : vector<16x1xf32> to vector<16x32xf32>
    %153 = arith.subf %143, %152 : vector<16x32xf32>
    %154 = arith.mulf %153, %153 : vector<16x32xf32>
    %cst_33 = arith.constant dense<0.000000e+00> : vector<16xf32>
    %155 = vector.multi_reduction <add>, %154, %cst_33 [1] : vector<16x32xf32> to vector<16xf32>
    %156 = vector.shape_cast %155 : vector<16xf32> to vector<16x1xf32>
    %cst_34 = arith.constant 3.200000e+01 : f32
    %157 = vector.broadcast %cst_34 : f32 to vector<16x1xf32>
    %158 = arith.divf %156, %157 : vector<16x1xf32>
    %159 = vector.broadcast %151 : vector<16x1xf32> to vector<16x32xf32>
    %160 = arith.subf %143, %159 : vector<16x32xf32>
    %cst_35 = arith.constant 9.99999974E-6 : f32
    %161 = vector.broadcast %cst_35 : f32 to vector<16x1xf32>
    %162 = arith.addf %158, %161 : vector<16x1xf32>
    %163 = math.rsqrt %162 : vector<16x1xf32>
    %164 = vector.broadcast %163 : vector<16x1xf32> to vector<16x32xf32>
    %165 = arith.mulf %160, %164 : vector<16x32xf32>
    %166 = vector.shape_cast %145 : vector<32xf32> to vector<1x32xf32>
    %167 = vector.broadcast %166 : vector<1x32xf32> to vector<16x32xf32>
    %168 = arith.mulf %165, %167 : vector<16x32xf32>
    %169 = vector.shape_cast %147 : vector<32xf32> to vector<1x32xf32>
    %170 = vector.broadcast %169 : vector<1x32xf32> to vector<16x32xf32>
    %171 = arith.addf %168, %170 : vector<16x32xf32>
    %c0_36 = arith.constant 0 : index
    %c0_37 = arith.constant 0 : index
    %172 = vector.load %arg10[%c0_36, %c0_37] : memref<32x128xf32, #tpu.memory_space<vmem>>, vector<32x128xf32>
    %cst_38 = arith.constant dense<0.000000e+00> : vector<16x128xf32>
    %173 = tpu.matmul %171, %172, %cst_38 {dimension_numbers = #tpu.dot_dimension_numbers<[1], [0], [0], [1], [0, 0, 1, 1], [], []>} : vector<16x32xf32>, vector<32x128xf32>, vector<16x128xf32> -> vector<16x128xf32>
    %c0_39 = arith.constant 0 : index
    %c0_40 = arith.constant 0 : index
    %174 = vector.load %arg11[%c0_39, %c0_40] : memref<1x128xf32, #tpu.memory_space<vmem>>, vector<1x128xf32>
    %175 = vector.shape_cast %174 : vector<1x128xf32> to vector<128xf32>
    %176 = vector.shape_cast %175 : vector<128xf32> to vector<1x128xf32>
    %177 = vector.broadcast %176 : vector<1x128xf32> to vector<16x128xf32>
    %178 = arith.addf %173, %177 : vector<16x128xf32>
    %cst_41 = arith.constant 5.000000e-01 : f32
    %179 = vector.broadcast %cst_41 : f32 to vector<16x128xf32>
    %180 = arith.mulf %179, %178 : vector<16x128xf32>
    %cst_42 = arith.constant 0.707106769 : f32
    %181 = vector.broadcast %cst_42 : f32 to vector<16x128xf32>
    %182 = arith.mulf %178, %181 : vector<16x128xf32>
    %183 = math.absf %182 : vector<16x128xf32>
    %cst_43 = arith.constant 0.327591091 : f32
    %184 = vector.broadcast %cst_43 : f32 to vector<16x128xf32>
    %185 = arith.mulf %184, %183 : vector<16x128xf32>
    %cst_44 = arith.constant 1.000000e+00 : f32
    %186 = vector.broadcast %cst_44 : f32 to vector<16x128xf32>
    %187 = arith.addf %186, %185 : vector<16x128xf32>
    %cst_45 = arith.constant 1.000000e+00 : f32
    %188 = vector.broadcast %cst_45 : f32 to vector<16x128xf32>
    %189 = arith.divf %188, %187 : vector<16x128xf32>
    %cst_46 = arith.constant 1.06140542 : f32
    %190 = vector.broadcast %cst_46 : f32 to vector<16x128xf32>
    %191 = arith.mulf %190, %189 : vector<16x128xf32>
    %cst_47 = arith.constant -1.45315206 : f32
    %192 = vector.broadcast %cst_47 : f32 to vector<16x128xf32>
    %193 = arith.addf %191, %192 : vector<16x128xf32>
    %194 = arith.mulf %193, %189 : vector<16x128xf32>
    %cst_48 = arith.constant 1.42141378 : f32
    %195 = vector.broadcast %cst_48 : f32 to vector<16x128xf32>
    %196 = arith.addf %194, %195 : vector<16x128xf32>
    %197 = arith.mulf %196, %189 : vector<16x128xf32>
    %cst_49 = arith.constant -0.284496725 : f32
    %198 = vector.broadcast %cst_49 : f32 to vector<16x128xf32>
    %199 = arith.addf %197, %198 : vector<16x128xf32>
    %200 = arith.mulf %199, %189 : vector<16x128xf32>
    %cst_50 = arith.constant 0.254829586 : f32
    %201 = vector.broadcast %cst_50 : f32 to vector<16x128xf32>
    %202 = arith.addf %200, %201 : vector<16x128xf32>
    %203 = arith.mulf %202, %189 : vector<16x128xf32>
    %cst_51 = arith.constant 0.000000e+00 : f32
    %204 = vector.broadcast %cst_51 : f32 to vector<16x128xf32>
    %205 = arith.subf %204, %183 : vector<16x128xf32>
    %206 = arith.mulf %205, %183 : vector<16x128xf32>
    %207 = math.exp %206 : vector<16x128xf32>
    %208 = arith.mulf %203, %207 : vector<16x128xf32>
    %cst_52 = arith.constant 1.000000e+00 : f32
    %209 = vector.broadcast %cst_52 : f32 to vector<16x128xf32>
    %210 = arith.subf %209, %208 : vector<16x128xf32>
    %cst_53 = arith.constant 0.000000e+00 : f32
    %211 = vector.broadcast %cst_53 : f32 to vector<16x128xf32>
    %212 = arith.cmpf oge, %182, %211 : vector<16x128xf32>
    %cst_54 = arith.constant 0.000000e+00 : f32
    %213 = vector.broadcast %cst_54 : f32 to vector<16x128xf32>
    %214 = arith.subf %213, %210 : vector<16x128xf32>
    %215 = arith.select %212, %210, %214 : vector<16x128xi1>, vector<16x128xf32>
    %cst_55 = arith.constant 1.000000e+00 : f32
    %216 = vector.broadcast %cst_55 : f32 to vector<16x128xf32>
    %217 = arith.addf %216, %215 : vector<16x128xf32>
    %218 = arith.mulf %180, %217 : vector<16x128xf32>
    %c0_56 = arith.constant 0 : index
    %c0_57 = arith.constant 0 : index
    %219 = vector.load %arg12[%c0_56, %c0_57] : memref<128x32xf32, #tpu.memory_space<vmem>>, vector<128x32xf32>
    %cst_58 = arith.constant dense<0.000000e+00> : vector<16x32xf32>
    %220 = tpu.matmul %218, %219, %cst_58 {dimension_numbers = #tpu.dot_dimension_numbers<[1], [0], [0], [1], [0, 0, 1, 1], [], []>} : vector<16x128xf32>, vector<128x32xf32>, vector<16x32xf32> -> vector<16x32xf32>
    %221 = arith.addf %143, %220 : vector<16x32xf32>
    %c0_59 = arith.constant 0 : index
    %c0_60 = arith.constant 0 : index
    %222 = vector.load %arg13[%c0_59, %c0_60] : memref<1x32xf32, #tpu.memory_space<vmem>>, vector<1x32xf32>
    %223 = vector.shape_cast %222 : vector<1x32xf32> to vector<32xf32>
    %224 = vector.shape_cast %223 : vector<32xf32> to vector<1x32xf32>
    %225 = vector.broadcast %224 : vector<1x32xf32> to vector<16x32xf32>
    %226 = arith.addf %221, %225 : vector<16x32xf32>
    %c0_61 = arith.constant 0 : index
    %c0_62 = arith.constant 0 : index
    %227 = vector.load %arg14[%c0_61, %c0_62] : memref<16x32xf32, #tpu.memory_space<vmem>>, vector<16x32xf32>
    tpu.vector_store %arg14[%c0_61, %c0_62], %226 {strides = array<i32>} : memref<16x32xf32, #tpu.memory_space<vmem>>, vector<16x32xf32>,
    return
  }
  func.func @transform_0(%arg0: i32) -> (i32, i32) {
    %c0_i32 = arith.constant 0 : i32
    %c0_i32_0 = arith.constant 0 : i32
    return %arg0, %c0_i32 : i32, i32
  }
  func.func @transform_1(%arg0: i32) -> (i32, i32) {
    %c0_i32 = arith.constant 0 : i32
    %c0_i32_0 = arith.constant 0 : i32
    %c0_i32_1 = arith.constant 0 : i32
    return %c0_i32, %c0_i32_0 : i32, i32
  }
  func.func @transform_2(%arg0: i32) -> (i32, i32) {
    %c0_i32 = arith.constant 0 : i32
    %c0_i32_0 = arith.constant 0 : i32
    %c0_i32_1 = arith.constant 0 : i32
    return %c0_i32, %c0_i32_0 : i32, i32
  }
  func.func @transform_3(%arg0: i32) -> (i32, i32) {
    %c0_i32 = arith.constant 0 : i32
    %c0_i32_0 = arith.constant 0 : i32
    %c0_i32_1 = arith.constant 0 : i32
    return %c0_i32, %c0_i32_0 : i32, i32
  }
  func.func @transform_4(%arg0: i32) -> (i32, i32) {
    %c0_i32 = arith.constant 0 : i32
    %c0_i32_0 = arith.constant 0 : i32
    %c0_i32_1 = arith.constant 0 : i32
    return %c0_i32, %c0_i32_0 : i32, i32
  }
  func.func @transform_5(%arg0: i32) -> (i32, i32) {
    %c0_i32 = arith.constant 0 : i32
    %c0_i32_0 = arith.constant 0 : i32
    %c0_i32_1 = arith.constant 0 : i32
    return %c0_i32, %c0_i32_0 : i32, i32
  }
  func.func @transform_6(%arg0: i32) -> (i32, i32) {
    %c0_i32 = arith.constant 0 : i32
    %c0_i32_0 = arith.constant 0 : i32
    %c0_i32_1 = arith.constant 0 : i32
    return %c0_i32, %c0_i32_0 : i32, i32
  }
  func.func @transform_7(%arg0: i32) -> (i32, i32) {
    %c0_i32 = arith.constant 0 : i32
    %c0_i32_0 = arith.constant 0 : i32
    %c0_i32_1 = arith.constant 0 : i32
    return %c0_i32, %c0_i32_0 : i32, i32
  }
  func.func @transform_8(%arg0: i32) -> (i32, i32) {
    %c0_i32 = arith.constant 0 : i32
    %c0_i32_0 = arith.constant 0 : i32
    %c0_i32_1 = arith.constant 0 : i32
    return %c0_i32, %c0_i32_0 : i32, i32
  }
  func.func @transform_9(%arg0: i32) -> (i32, i32) {
    %c0_i32 = arith.constant 0 : i32
    %c0_i32_0 = arith.constant 0 : i32
    %c0_i32_1 = arith.constant 0 : i32
    return %c0_i32, %c0_i32_0 : i32, i32
  }
  func.func @transform_10(%arg0: i32) -> (i32, i32) {
    %c0_i32 = arith.constant 0 : i32
    %c0_i32_0 = arith.constant 0 : i32
    %c0_i32_1 = arith.constant 0 : i32
    return %c0_i32, %c0_i32_0 : i32, i32
  }
  func.func @transform_11(%arg0: i32) -> (i32, i32) {
    %c0_i32 = arith.constant 0 : i32
    %c0_i32_0 = arith.constant 0 : i32
    %c0_i32_1 = arith.constant 0 : i32
    return %c0_i32, %c0_i32_0 : i32, i32
  }
  func.func @transform_12(%arg0: i32) -> (i32, i32) {
    %c0_i32 = arith.constant 0 : i32
    %c0_i32_0 = arith.constant 0 : i32
    %c0_i32_1 = arith.constant 0 : i32
    return %c0_i32, %c0_i32_0 : i32, i32
  }
  func.func @transform_13(%arg0: i32) -> (i32, i32) {
    %c0_i32 = arith.constant 0 : i32
    %c0_i32_0 = arith.constant 0 : i32
    return %arg0, %c0_i32 : i32, i32
  }
}

</mosaic_0001>

<bundles_post_ra>
// kernel: tpu_custom_call.1
= control target key start
LH: loop header
LB: loop body
LE: loop exit
PB: predicated region body
PF: predicated region fallthrough
CT: control target
= control target key end

     0   :  { %s3382_s0 = inlined_call_operand.vmem [shape: f32[32,32], index: 0, kind: input, shape index: {}]   ;;  %s3383_s1 = inlined_call_operand.vmem [shape: f32[1,32], index: 1, kind: input, shape index: {}]   ;;  %s3384_s2 = inlined_call_operand.vmem [shape: f32[1,32], index: 2, kind: input, shape index: {}]   ;;  %s3385_s3 = inlined_call_operand.vmem [shape: f32[32,96], index: 3, kind: input, shape index: {}]   ;;  %s3386_s4 = inlined_call_operand.vmem [shape: f32[1,96], index: 4, kind: input, shape index: {}]   ;;  %s3387_s5 = inlined_call_operand.vmem [shape: f32[32,32], index: 5, kind: input, shape index: {}]   ;;  %s3388_s6 = inlined_call_operand.vmem [shape: f32[1,32], index: 6, kind: input, shape index: {}]   ;;  %s3389_s7 = inlined_call_operand.vmem [shape: f32[1,32], index: 7, kind: input, shape index: {}]   ;;  %s3390_s8 = inlined_call_operand.vmem [shape: f32[1,32], index: 8, kind: input, shape index: {}]   ;;  %s3391_s9 = inlined_call_operand.vmem [shape: f32[32,128], index: 9, kind: input, shape index: {}]   ;;  %s3392_s10 = inlined_call_operand.vmem [shape: f32[1,128], index: 10, kind: input, shape index: {}]   ;;  %s3393_s11 = inlined_call_operand.vmem [shape: f32[128,32], index: 11, kind: input, shape index: {}]   ;;  %s3394_s12 = inlined_call_operand.vmem [shape: f32[1,32], index: 12, kind: input, shape index: {}]   ;;  %s3395_s13 = inlined_call_operand.hbm [shape: f32[32,32], index: 13, kind: output, shape index: {}]  }
   0x1   :  { %3398 = sst [smem:[#allocation5_spill]] %s3382_s0 }
   0x2   :  { %3399 = sst [smem:[#allocation6_spill]] %s3383_s1 }
   0x3   :  { %3400 = sst [smem:[#allocation7_spill]] %s3384_s2 }
   0x4   :  { %3401 = sst [smem:[#allocation8_spill]] %s3385_s3 }
   0x5   :  { %18 = vsyncpa [#allocation3], 0 }
   0x6   :  { %20 = vsyncpa [#allocation3 + $0x1], 0  ;;  %s2956_s25 = smov 0   ;;  %s2958_s26 = smov 0  }
   0x7   :  { %s2960_s27 = smov 0   ;;  %s2962_s28 = smov 0  }
   0x8 LB: > { %s2977_s29 = sadd.s32 4294967295, %s2871_s28   ;;  %s2445_s30 = sadd.s32 4294967294, %s2871_s28   ;;  %s2871_s28 = sphi %s2962_s28, %s3412_s28   ;;  %s2867_s27 = sphi %s2960_s27, %s3411_s27   ;;  %s2863_s26 = sphi %s2958_s26, %s3410_s26   ;;  %s2859_s25 = sphi %s2956_s25, %s3409_s25  }
   0x9   : > { %s2981_s14 = sadd.s32 1, %s2871_s28   ;;  %s311_s15 = sadd.s32 1, %s2867_s27 }
   0xa   : > { %s308_s16 = ssub.s32 %s2871_s28, %s2981_s14  ;;  %p321_p0 = scmp.ne.s32.totalorder %s2867_s27, %s2863_s26 }
   0xb   : > { %p309_p1 = scmp.eq.s32.totalorder %s308_s16, 0  ;;  %p322_p2 = scmp.eq.s32.totalorder %s2977_s29, 1 }
   0xc   : > { %p327_p3 = scmp.ne.s32.totalorder %s2863_s26, %s2859_s25  ;;  %p328_p4 = scmp.eq.s32.totalorder %s2445_s30, 1 }
   0xd   : > { %s2992_s17 = scalar_select %p309_p1, %s2867_s27, %s311_s15  }
   0xe   : > { %p2994_p5 = por %p322_p2, %p321_p0  ;;  %p2998_p6 = por %p328_p4, %p327_p3 }
   0xf   : > { %p2448_p7 = scmp.ge.s32.totalorder %s2871_s28, 1  ;;  %p391_p8 = scmp.lt.s32.totalorder %s2871_s28, 3 }
  0x11   : > { %p392_p9 = pnand %p2448_p7, %p391_p8 }
  0x12   : > { %s2450_s20 = sshll.u32 (!%p392_p9), %s2977_s29, 1  ;;  %s3404_s0 = sld [smem:[#allocation5_spill]] (!%p392_p9) }
  0x13   : > { %395 = sbr.rel (%p392_p9) target bundleno = 2631 (0xa47), region = 72  ;;  %p436_p10 = scmp.lt.s32.totalorder (!%p392_p9), %s2450_s20, 3 }
  0x14   : > { %s3405_s3 = sld [smem:[#allocation8_spill]] (!%p392_p9)  ;;  %s2875_s23 = smov (!%p392_p9), 112  }
  0x15   : > { %s3406_s1 = sld [smem:[#allocation6_spill]] (!%p392_p9)  ;;  %s2877_s30 = smov (!%p392_p9), 104  }
  0x16   : > { %s3407_s2 = sld [smem:[#allocation7_spill]] (!%p392_p9)  ;;  %s2878_s15 = smov (!%p392_p9), 96  }
  0x17   : > { %s2880_s16 = smov (!%p392_p9), 64   ;;  %s3408_s22 = smov (!%p392_p9), 8  }
  0x18   : > { %s3414_s20 = smov (!%p436_p10, %s2450_s20), 3  ;;  %vm446_vm0 = vcmask 261120   ;;  %v2873_v34 = vmov 0.0   ;;  %v2454_v36 = vld [vmem:[%s3386_s4] ss:$0 sm:$0xff]  ;;  %vm2874_vm1 = vmmov 0   ;;  %v612_v62 = vlaneseq }
  0x19   : > { %s2451_s21 = sshll.u32 %s3414_s20, 3  ;;  %2585 = vmatprep.subr.mxu0 %v2873_v34  ;;  %2587 = vmatprep.mubr.msk.f32.mxu0 %vm2874_vm1, %v2873_v34  ;;  %vm620_vm2 = vcmask 64512   ;;  %s3396_s20 = smov 8   ;;  %vm1960_vm4 = vcmask 130048   ;;  %vm1962_vm5 = vcmask 195584  }
  0x1a   : > { %s439_s24 = scalar_lea.vmem %s3404_s0, %s2451_s21  ;;  %v493_v14 = vld [vmem:[%s3405_s3 + $0x18] sm:$0xff]  ;;  %v492_v15 = vld [vmem:[%s3405_s3 + $0x10] sm:$0xff]  ;;  %v491_v16 = vld [vmem:[%s3405_s3 + $0x8] sm:$0xff]  ;;  %v613_v63 = vshrl.u32 %v612_v62, 7  ;;  %s2882_s21 = smov 16  }
  0x1b   : > { %v3008_v0 = vld [vmem:[%s439_s24] sm:$0xff]  ;;  %v3010_v1 = vld [vmem:[%s439_s24 + $0x8] sm:$0xff]  ;;  %2564 = vmatprep.subr.mxu1 %v493_v14  ;;  %s2876_s24 = smov 120  }
  0x1c   : > { %v447_v2 = vsel %vm446_vm0, %v3008_v0, 0.0  ;;  %v450_v3 = vsel %vm446_vm0, %v3010_v1, 0.0  ;;  %2565 = vmatpush3.msra.mxu1 %v493_v14  ;;  %v490_v17 = vld [vmem:[%s3405_s3] sm:$0xff] }
  0x1d   : > { %448 = vadd.xlane.f32.xlu0 %v447_v2  ;;  %2566 = vmatprep.subr.mxu1 %v492_v15  ;;  %v2452_v25 = vld [vmem:[%s3406_s1] ss:$0 sm:$0xff]  ;;  %v615_v2 = vand.u32 127, %v612_v62 }
  0x1e   : > { %2567 = vmatpush3.msra.mxu1 %v492_v15  ;;  %v2453_v27 = vld [vmem:[%s3407_s2] ss:$0 sm:$0xff] }
  0x1f   : > { %2568 = vmatprep.subr.mxu1 %v491_v16  ;;  %vm616_vm3 = vcmp.le.s32.totalorder %v615_v2, %v613_v63 }
  0x20   : > { %2569 = vmatpush3.msra.mxu1 %v491_v16 }
  0x21   : > { %451 = vadd.xlane.f32.xlu0 %v450_v3  ;;  %2570 = vmatprep.subr.mxu1 %v490_v17  ;;  %v2879_v3 = vmov -1e+09  }
  0x22   : > { %2571 = vmatpush3.msra.mxu1 %v490_v17 }
  0x23   : > { %2575 = vmatprep.subr.mxu1 %v2873_v34 }
  0xa6   : > { %v449_v4 = vpop.xlane.xlu0 %448 }
  0xa7   : > { %v454_v5 = vmul.f32 0.03125, %v449_v4  ;;  %v617_v4 = vsel %vm616_vm3, 0.0, %v2879_v3 }
  0xa9   : > { %v456_v6 = vsub.f32 %v3008_v0, %v454_v5 }
  0xaa   : > { %v452_v7 = vpop.xlane.xlu0 %451 }
  0xab   : > { %v455_v8 = vmul.f32 0.03125, %v452_v7  ;;  %v458_v9 = vmul.f32 %v456_v6, %v456_v6 }
  0xad   : > { %v457_v10 = vsub.f32 %v3010_v1, %v455_v8  ;;  %v460_v11 = vsel %vm446_vm0, %v458_v9, 0.0 }
  0xae   : > { %461 = vadd.xlane.f32.xlu1 %v460_v11 }
  0xaf   : > { %v459_v12 = vmul.f32 %v457_v10, %v457_v10 }
  0xb1   : > { %v463_v13 = vsel %vm446_vm0, %v459_v12, 0.0 }
  0xb2   : > { %464 = vadd.xlane.f32.xlu1 %v463_v13 }
 0x137   : > { %v462_v18 = vpop.xlane.xlu1 %461 }
 0x138   : > { %v466_v19 = vmul.f32 0.03125, %v462_v18 }
 0x13a   : > { %v468_v20 = vadd.f32 1e-05, %v466_v19 }
 0x13b   : > { %v465_v21 = vpop.xlane.xlu1 %464 }
 0x13c   : > { %2763 = vrsqrt.f32 %v468_v20  ;;  %v467_v22 = vmul.f32 0.03125, %v465_v21 }
 0x13e   : > { %v469_v23 = vadd.f32 1e-05, %v467_v22 }
 0x140   : > { %2765 = vrsqrt.f32 %v469_v23 }
 0x149   : > { %v2764_v24 = vpop.eup %2763 }
 0x14a   : > { %v472_v26 = vmul.f32 %v2764_v24, %v456_v6 }
 0x14c   : > { %v480_v28 = vmul.f32 %v2452_v25, %v472_v26 }
 0x14d   : > { %v2766_v29 = vpop.eup %2765 }
 0x14e   : > { %v473_v30 = vmul.f32 %v2766_v29, %v457_v10  ;;  %v488_v31 = vadd.f32 %v2453_v27, %v480_v28 }
 0x150   : > { %v481_v32 = vmul.f32 %v2452_v25, %v473_v30  ;;  %2572 = vmatprep.mubr.msk.f32.mxu1 %vm446_vm0, %v488_v31 }
 0x152   : > { %v489_v33 = vadd.f32 %v2453_v27, %v481_v32 }
 0x154   : > { %2573 = vmatmul.mubr.msk.f32.vlgmr.msra.gmra.mxu1 %vm446_vm0, %v489_v33 }
 0x155   : > { %2577 = vmatprep.mubr.msk.f32.mxu1 %vm2874_vm1, %v2873_v34 }
 0x214   : > { %v2574_v35 = vpop.f32.mrf.mxu1 }
 0x215   : > { %v3054_v39 = vadd.f32 %v2574_v35, %v2454_v36 }
 0x216   : > { %v573_v37 = vpop.f32.mrf.mxu1 }
 0x217   : > { %v3049_v38 = vadd.f32 %v2454_v36, %v573_v37  ;;  %v583_v45 = vmul.f32 0.35355338, %v3054_v39 }
 0x219   : > { %601 = vrot.lane.b32.xlu1 %v3049_v38, %s2875_s23  ;;  %599 = vrot.lane.b32.xlu0 %v3049_v38, %s2876_s24  ;;  %v582_v40 = vmul.f32 0.35355338, %v3049_v38 }
 0x21d   : > { %603 = vrot.lane.b32.xlu1 %v3049_v38, %s2877_s30  ;;  %608 = vrot.lane.b32.xlu0 %v3054_v39, %s2875_s23 }
 0x221   : > { %606 = vrot.lane.b32.xlu1 %v3054_v39, %s2876_s24  ;;  %618 = vrot.lane.b32.xlu0 %v3049_v38, %s2878_s15 }
 0x225   : > { %610 = vrot.lane.b32.xlu1 %v3054_v39, %s2877_s30  ;;  %585 = vrot.lane.b32.xlu0 %v582_v40, %s2876_s24 }
 0x229   : > { %923 = vrot.lane.b32.xlu1 %v3054_v39, %s2878_s15  ;;  %589 = vrot.lane.b32.xlu0 %v582_v40, %s2877_s30 }
 0x22d   : > { %587 = vrot.lane.b32.xlu1 %v582_v40, %s2875_s23 }
 0x28b   : > { %v3068_v41 = vpop.permute.xlu1 %601  ;;  %v3070_v42 = vpop.permute.xlu0 %599 }
 0x28c   : > { %695 = vrot.lane.b32.xlu1 %v3070_v42, %s2878_s15 }
 0x28f   : > { %v3073_v43 = vpop.permute.xlu1 %603  ;;  %v3075_v44 = vpop.permute.xlu0 %608 }
 0x290   : > { %771 = vrot.lane.b32.xlu1 %v3068_v41, %s2878_s15  ;;  %847 = vrot.lane.b32.xlu0 %v3073_v43, %s2878_s15 }
 0x293   : > { %v3080_v46 = vpop.permute.xlu1 %606  ;;  %v619_v47 = vpop.permute.xlu0 %618 }
 0x294   : > { %2576 = vmatpush3.xpose.msk.msra.mxu1 %vm620_vm2, %v619_v47  ;;  %592 = vrot.lane.b32.xlu1 %v583_v45, %s2876_s24  ;;  %s2884_s24 = smov [#allocation2]  }
 0x295   : > { %999 = vrot.lane.b32.xlu0 %v3080_v46, %s2878_s15  ;;  %2580 = vmatprep.subr.mxu1 %v2873_v34 }
 0x297   : > { %v3085_v48 = vpop.permute.xlu1 %610  ;;  %2578 = vmatmul.mubr.msk.f32.vlgmr.msra.gmra.mxu1 %vm620_vm2, %v582_v40  ;;  %v586_v50 = vpop.permute.xlu0 %585 }
 0x298   : > { %1151 = vrot.lane.b32.xlu1 %v3085_v48, %s2878_s15  ;;  %2582 = vmatprep.mubr.msk.f32.mxu1 %vm2874_vm1, %v2873_v34 }
 0x299   : > { %1075 = vrot.lane.b32.xlu0 %v3075_v44, %s2878_s15  ;;  %s2495_s15 = sshll.u32 %s2977_s29, 8 }
 0x29a   : > { %s3335_s2 = scalar_lea.hbm %s3395_s13, %s2495_s15 }
 0x29b   : > { %v924_v49 = vpop.permute.xlu1 %923  ;;  %v590_v52 = vpop.permute.xlu0 %589 }
 0x29c   : > { %596 = vrot.lane.b32.xlu1 %v583_v45, %s2877_s30  ;;  %s2815_s30 = sshll.u32 %s2884_s24, 4  ;;  %s2816_s30 = int_to_ptr.vmem [resolvable:$false] %s2815_s30 }
 0x29d   : > { %594 = vrot.lane.b32.xlu0 %v583_v45, %s2875_s23  ;;  %s2817_s15 = scalar_lea.vmem %s2816_s30, 512 }
 0x29f   : > { %v588_v51 = vpop.permute.xlu1 %587 }
 0x2fe   : > { %v696_v53 = vpop.permute.xlu1 %695 }
 0x2ff   : > { %2581 = vmatpush3.xpose.msk.msra.mxu1 %vm620_vm2, %v696_v53 }
 0x300   : > { %2590 = vmatprep.subr.mxu1 %v2873_v34 }
 0x302   : > { %v772_v54 = vpop.permute.xlu1 %771  ;;  %v848_v55 = vpop.permute.xlu0 %847  ;;  %2583 = vmatmul.mubr.msk.f32.vlgmr.msra.gmra.mxu1 %vm620_vm2, %v586_v50 }
 0x303   : > { %2586 = vmatpush3.xpose.msk.msra.mxu0 %vm620_vm2, %v772_v54  ;;  %2591 = vmatpush3.xpose.msk.msra.mxu1 %vm620_vm2, %v848_v55 }
 0x304   : > { %2592 = vmatprep.mubr.msk.f32.mxu1 %vm2874_vm1, %v2873_v34  ;;  %2595 = vmatprep.subr.mxu0 %v2873_v34 }
 0x305   : > { %2600 = vmatprep.subr.mxu1 %v2873_v34 }
 0x306   : > { %2588 = vmatmul.mubr.msk.f32.vlgmr.msra.gmra.mxu0 %vm620_vm2, %v588_v51  ;;  %v593_v56 = vpop.permute.xlu1 %592  ;;  %2593 = vmatmul.mubr.msk.f32.vlgmr.msra.gmra.mxu1 %vm620_vm2, %v590_v52 }
 0x307   : > { %v1000_v57 = vpop.permute.xlu0 %999  ;;  %2596 = vmatpush3.xpose.msk.msra.mxu0 %vm620_vm2, %v924_v49  ;;  %2597 = vmatprep.mubr.msk.f32.mxu0 %vm2874_vm1, %v2873_v34 }
 0x308   : > { %2601 = vmatpush3.xpose.msk.msra.mxu1 %vm620_vm2, %v1000_v57  ;;  %2602 = vmatprep.mubr.msk.f32.mxu1 %vm2874_vm1, %v2873_v34 }
 0x309   : > { %2605 = vmatprep.subr.mxu0 %v2873_v34  ;;  %2610 = vmatprep.subr.mxu1 %v2873_v34 }
 0x30a   : > { %2598 = vmatmul.mubr.msk.f32.vlgmr.msra.gmra.mxu0 %vm620_vm2, %v583_v45  ;;  %v1152_v58 = vpop.permute.xlu1 %1151 }
 0x30b   : > { %v1076_v59 = vpop.permute.xlu0 %1075  ;;  %2603 = vmatmul.mubr.msk.f32.vlgmr.msra.gmra.mxu1 %vm620_vm2, %v593_v56  ;;  %2607 = vmatprep.mubr.msk.f32.mxu0 %vm2874_vm1, %v2873_v34 }
 0x30c   : > { %2606 = vmatpush3.xpose.msk.msra.mxu0 %vm620_vm2, %v1076_v59  ;;  %2611 = vmatpush3.xpose.msk.msra.mxu1 %vm620_vm2, %v1152_v58 }
 0x30d   : > { %2612 = vmatprep.mubr.msk.f32.mxu1 %vm2874_vm1, %v2873_v34  ;;  %2620 = vmatprep.subr.mxu1 %v2873_v34 }
 0x30e   : > { %v597_v60 = vpop.permute.xlu1 %596  ;;  %2615 = vmatprep.subr.mxu0 %v2873_v34 }
 0x30f   : > { %v595_v61 = vpop.permute.xlu0 %594  ;;  %2613 = vmatmul.mubr.msk.f32.vlgmr.msra.gmra.mxu1 %vm620_vm2, %v597_v60 }
 0x310   : > { %2608 = vmatmul.mubr.msk.f32.vlgmr.msra.gmra.mxu0 %vm620_vm2, %v595_v61  ;;  %2622 = vmatprep.mubr.msk.f32.mxu1 %vm2874_vm1, %v2873_v34 }
 0x311   : > { %2617 = vmatprep.mubr.msk.f32.mxu0 %vm2874_vm1, %v2873_v34 }
 0x357   : > { %v691_v5 = vpop.f32.mrf.mxu1 }
 0x358   : > { %v692_v6 = vadd.f32 %v691_v5, %v617_v4 }
 0x359   : > { %v2579_v7 = vpop.f32.mrf.mxu1 }
 0x35a   : > { %v1227_v8 = vsel %vm620_vm2, %v692_v6, -inf }
 0x35b   : > { %1228 = vmax.xlane.f32.xlu0 %v1227_v8 }
 0x3c2   : > { %v767_v9 = vpop.f32.mrf.mxu1 }
 0x3c3   : > { %v768_v10 = vadd.f32 %v767_v9, %v617_v4 }
 0x3c4   : > { %v2584_v11 = vpop.f32.mrf.mxu1 }
 0x3c5   : > { %v1230_v12 = vsel %vm620_vm2, %v768_v10, -inf }
 0x3c6   : > { %v843_v13 = vpop.f32.mrf.mxu0  ;;  %1231 = vmax.xlane.f32.xlu1 %v1230_v12  ;;  %v919_v14 = vpop.f32.mrf.mxu1 }
 0x3c7   : > { %v844_v15 = vadd.f32 %v843_v13, %v617_v4  ;;  %v920_v18 = vadd.f32 %v919_v14, %v617_v4 }
 0x3c8   : > { %v2589_v16 = vpop.f32.mrf.mxu0  ;;  %v2594_v17 = vpop.f32.mrf.mxu1 }
 0x3c9   : > { %v1233_v19 = vsel %vm620_vm2, %v844_v15, -inf  ;;  %v1236_v26 = vsel %vm620_vm2, %v920_v18, -inf }
 0x3ca   : > { %v995_v20 = vpop.f32.mrf.mxu0  ;;  %1234 = vmax.xlane.f32.xlu0 %v1233_v19 }
 0x3cb   : > { %v1071_v21 = vpop.f32.mrf.mxu1  ;;  %v996_v24 = vadd.f32 %v995_v20, %v617_v4 }
 0x3cc   : > { %v1072_v22 = vadd.f32 %v1071_v21, %v617_v4  ;;  %v2599_v23 = vpop.f32.mrf.mxu0 }
 0x3cd   : > { %v2604_v25 = vpop.f32.mrf.mxu1  ;;  %v1239_v32 = vsel %vm620_vm2, %v996_v24, -inf }
 0x3ce   : > { %1237 = vmax.xlane.f32.xlu0 %v1236_v26  ;;  %v1242_v27 = vsel %vm620_vm2, %v1072_v22, -inf }
 0x3cf   : > { %1243 = vmax.xlane.f32.xlu1 %v1242_v27  ;;  %v1223_v28 = vpop.f32.mrf.mxu1 }
 0x3d0   : > { %v1147_v29 = vpop.f32.mrf.mxu0  ;;  %v1224_v45 = vadd.f32 %v1223_v28, %v617_v4 }
 0x3d1   : > { %v1148_v30 = vadd.f32 %v1147_v29, %v617_v4  ;;  %v2614_v31 = vpop.f32.mrf.mxu1 }
 0x3d2   : > { %v2609_v33 = vpop.f32.mrf.mxu0  ;;  %1240 = vmax.xlane.f32.xlu0 %v1239_v32  ;;  %v1248_v49 = vsel %vm620_vm2, %v1224_v45, -inf }
 0x3d3   : > { %v1245_v35 = vsel %vm620_vm2, %v1148_v30, -inf }
 0x3d6   : > { %1246 = vmax.xlane.f32.xlu0 %v1245_v35 }
 0x3e0   : > { %1415 = vrot.lane.b32.xlu1 %v3070_v42, %s2880_s16 }
 0x3e4   : > { %1491 = vrot.lane.b32.xlu1 %v3068_v41, %s2880_s16  ;;  %v1229_v36 = vpop.xlane.xlu0 %1228 }
 0x3e5   : > { %v1251_v37 = vsub.f32 %v692_v6, %v1229_v36 }
 0x3e7   : > { %v1259_v40 = vmul.f32 1.442695, %v1251_v37 }
 0x3e9   : > { %2767 = vpow2.f32 %v1259_v40 }
 0x3ec   : > { %1339 = vrot.lane.b32.xlu0 %v3049_v38, %s2880_s16 }
 0x3f6   : > { %v3142_v47 = vpop.eup %2767 }
 0x3f7   : > { %v1275_v50 = vsel %vm620_vm2, %v3142_v47, 0.0 }
 0x408   : > { %1249 = vmax.xlane.f32.xlu1 %v1248_v49 }
 0x40b   : > { %1276 = vadd.xlane.f32.xlu0 %v1275_v50 }
 0x419   : > { %1567 = vrot.lane.b32.xlu1 %v3073_v43, %s2880_s16 }
 0x44f   : > { %v1232_v41 = vpop.xlane.xlu1 %1231 }
 0x450   : > { %v1252_v42 = vsub.f32 %v768_v10, %v1232_v41 }
 0x452   : > { %v1261_v38 = vmul.f32 1.442695, %v1252_v42 }
 0x453   : > { %v1235_v51 = vpop.xlane.xlu0 %1234 }
 0x454   : > { %2769 = vpow2.f32 %v1261_v38  ;;  %v1253_v52 = vsub.f32 %v844_v15, %v1235_v51 }
 0x456   : > { %v1263_v53 = vmul.f32 1.442695, %v1253_v52 }
 0x457   : > { %v1238_v54 = vpop.xlane.xlu0 %1237 }
 0x458   : > { %2771 = vpow2.f32 %v1263_v53  ;;  %v1254_v55 = vsub.f32 %v920_v18, %v1238_v54  ;;  %v1244_v56 = vpop.xlane.xlu1 %1243 }
 0x459   : > { %v1256_v57 = vsub.f32 %v1072_v22, %v1244_v56 }
 0x45a   : > { %v1265_v58 = vmul.f32 1.442695, %v1254_v55 }
 0x45b   : > { %v1269_v59 = vmul.f32 1.442695, %v1256_v57  ;;  %v1241_v60 = vpop.xlane.xlu0 %1240 }
 0x45c   : > { %2773 = vpow2.f32 %v1265_v58  ;;  %v1255_v61 = vsub.f32 %v996_v24, %v1241_v60  ;;  %v1416_v62 = vpop.permute.xlu1 %1415 }
 0x45d   : > { %2621 = vmatpush3.msra.mxu1 %v1416_v62  ;;  %2775 = vpow2.f32 %v1269_v59 }
 0x45e   : > { %v1267_v43 = vmul.f32 1.442695, %v1255_v61  ;;  %2630 = vmatprep.subr.mxu1 %v2873_v34 }
 0x45f   : > { %v1247_v63 = vpop.xlane.xlu0 %1246 }
 0x460   : > { %2777 = vpow2.f32 %v1267_v43  ;;  %v1257_v2 = vsub.f32 %v1148_v30, %v1247_v63  ;;  %v1492_v17 = vpop.permute.xlu1 %1491 }
 0x461   : > { %v3150_v3 = vpop.eup %2769 }
 0x462   : > { %v1271_v4 = vmul.f32 1.442695, %v1257_v2  ;;  %v1278_v5 = vsel %vm620_vm2, %v3150_v3, 0.0 }
 0x463   : > { %v1340_v6 = vpop.permute.xlu0 %1339  ;;  %1279 = vadd.xlane.f32.xlu1 %v1278_v5 }
 0x464   : > { %2779 = vpow2.f32 %v1271_v4  ;;  %2616 = vmatpush3.msra.mxu0 %v1340_v6 }
 0x465   : > { %v3154_v7 = vpop.eup %2771  ;;  %2625 = vmatprep.subr.mxu0 %v2873_v34 }
 0x466   : > { %v1281_v8 = vsel %vm620_vm2, %v3154_v7, 0.0 }
 0x467   : > { %1282 = vadd.xlane.f32.xlu0 %v1281_v8 }
 0x469   : > { %v3159_v9 = vpop.eup %2773 }
 0x46a   : > { %v1284_v10 = vsel %vm620_vm2, %v3159_v9, 0.0  ;;  %v3163_v11 = vpop.eup %2775 }
 0x46b   : > { %1285 = vadd.xlane.f32.xlu1 %v1284_v10  ;;  %v1290_v14 = vsel %vm620_vm2, %v3163_v11, 0.0 }
 0x46d   : > { %v3165_v12 = vpop.eup %2777 }
 0x46e   : > { %v1287_v13 = vsel %vm620_vm2, %v3165_v12, 0.0 }
 0x46f   : > { %1288 = vadd.xlane.f32.xlu0 %v1287_v13  ;;  %1291 = vadd.xlane.f32.xlu1 %v1290_v14 }
 0x471   : > { %v3171_v15 = vpop.eup %2779 }
 0x472   : > { %v1293_v16 = vsel %vm620_vm2, %v3171_v15, 0.0 }
 0x473   : > { %1294 = vadd.xlane.f32.xlu0 %v1293_v16 }
 0x480   : > { %1719 = vrot.lane.b32.xlu1 %v3080_v46, %s2880_s16 }
 0x489   : > { %1643 = vrot.lane.b32.xlu0 %v3054_v39, %s2880_s16 }
 0x48d   : > { %1795 = vrot.lane.b32.xlu0 %v3075_v44, %s2880_s16 }
 0x491   : > { %v1250_v18 = vpop.xlane.xlu1 %1249 }
 0x492   : > { %v1258_v19 = vsub.f32 %v1224_v45, %v1250_v18 }
 0x494   : > { %v1273_v20 = vmul.f32 1.442695, %v1258_v19  ;;  %v1277_v21 = vpop.xlane.xlu0 %1276  ;;  %v1982_v19 = vld [vmem:[%s3387_s5 + $0x18] sm:$0xff] }
 0x495   : > { %2781 = vrcp.f32 %v1277_v21  ;;  %v1568_v44 = vpop.permute.xlu1 %1567 }
 0x496   : > { %2783 = vpow2.f32 %v1273_v20  ;;  %v1981_v20 = vld [vmem:[%s3387_s5 + $0x10] sm:$0xff] }
 0x4a2   : > { %v2782_v22 = vpop.eup %2781 }
 0x4a3   : > { %v3181_v23 = vpop.eup %2783  ;;  %v1307_v24 = vmul.f32 %v2782_v22, %v1277_v21 }
 0x4a4   : > { %v1296_v46 = vsel %vm620_vm2, %v3181_v23, 0.0 }
 0x4a5   : > { %v1315_v25 = vsub.f32 2.0, %v1307_v24  ;;  %1297 = vadd.xlane.f32.xlu1 %v1296_v46  ;;  %v1979_v24 = vld [vmem:[%s3387_s5] sm:$0xff] }
 0x4a7   : > { %v1323_v39 = vmul.f32 %v2782_v22, %v1315_v25  ;;  %v1980_v22 = vld [vmem:[%s3387_s5 + $0x8] sm:$0xff] }
 0x4a9   : > { %v1331_v26 = vmul.f32 %v3142_v47, %v1323_v39 }
 0x4ab   : > { %2618 = vmatmul.mubr.msk.f32.vlgmr.msra.gmra.mxu0 %vm620_vm2, %v1331_v26 }
 0x4ac   : > { %2626 = vmatpush3.msra.mxu0 %v1492_v17  ;;  %2627 = vmatprep.mubr.msk.f32.mxu0 %vm2874_vm1, %v2873_v34 }
 0x4ad   : > { %2635 = vmatprep.subr.mxu0 %v2873_v34 }
 0x4b6   : > { %1871 = vrot.lane.b32.xlu1 %v3085_v48, %s2880_s16 }
 0x4ec   : > { %v1280_v27 = vpop.xlane.xlu1 %1279 }
 0x4ed   : > { %2785 = vrcp.f32 %v1280_v27 }
 0x4f0   : > { %v1283_v28 = vpop.xlane.xlu0 %1282 }
 0x4f1   : > { %2787 = vrcp.f32 %v1283_v28 }
 0x4f4   : > { %v1286_v29 = vpop.xlane.xlu1 %1285 }
 0x4f5   : > { %2789 = vrcp.f32 %v1286_v29 }
 0x4f8   : > { %v1289_v30 = vpop.xlane.xlu0 %1288  ;;  %v1292_v31 = vpop.xlane.xlu1 %1291 }
 0x4f9   : > { %2791 = vrcp.f32 %v1289_v30 }
 0x4fa   : > { %v2786_v32 = vpop.eup %2785  ;;  %2793 = vrcp.f32 %v1292_v31 }
 0x4fb   : > { %v1308_v33 = vmul.f32 %v2786_v32, %v1280_v27 }
 0x4fc   : > { %v1295_v35 = vpop.xlane.xlu0 %1294  ;;  %v1720_v43 = vpop.permute.xlu1 %1719 }
 0x4fd   : > { %v1316_v36 = vsub.f32 2.0, %v1308_v33  ;;  %2795 = vrcp.f32 %v1295_v35 }
 0x4fe   : > { %v2788_v37 = vpop.eup %2787 }
 0x4ff   : > { %v1324_v40 = vmul.f32 %v2786_v32, %v1316_v36  ;;  %v1309_v45 = vmul.f32 %v2788_v37, %v1283_v28 }
 0x500   : > { %v1644_v55 = vpop.permute.xlu0 %1643 }
 0x501   : > { %v1332_v48 = vmul.f32 %v3150_v3, %v1324_v40  ;;  %v1317_v47 = vsub.f32 2.0, %v1309_v45 }
 0x502   : > { %v2790_v49 = vpop.eup %2789 }
 0x503   : > { %v1325_v50 = vmul.f32 %v2788_v37, %v1317_v47  ;;  %v1310_v41 = vmul.f32 %v2790_v49, %v1286_v29  ;;  %2623 = vmatmul.mubr.msk.f32.vlgmr.msra.gmra.mxu1 %vm620_vm2, %v1332_v48 }
 0x504   : > { %2631 = vmatpush3.msra.mxu1 %v1568_v44  ;;  %2632 = vmatprep.mubr.msk.f32.mxu1 %vm2874_vm1, %v2873_v34  ;;  %v1796_v6 = vpop.permute.xlu0 %1795 }
 0x505   : > { %v1333_v42 = vmul.f32 %v3154_v7, %v1325_v50  ;;  %v1318_v38 = vsub.f32 2.0, %v1310_v41  ;;  %2640 = vmatprep.subr.mxu1 %v2873_v34 }
 0x506   : > { %v2792_v51 = vpop.eup %2791 }
 0x507   : > { %v2794_v52 = vpop.eup %2793  ;;  %v1326_v53 = vmul.f32 %v2790_v49, %v1318_v38  ;;  %v1311_v54 = vmul.f32 %v2792_v51, %v1289_v30  ;;  %2628 = vmatmul.mubr.msk.f32.vlgmr.msra.gmra.mxu0 %vm620_vm2, %v1333_v42  ;;  %v2483_v42 = vld [vmem:[%s3388_s6] ss:$0 sm:$0xff] }
 0x508   : > { %v1312_v56 = vmul.f32 %v2794_v52, %v1292_v31  ;;  %2636 = vmatpush3.msra.mxu0 %v1644_v55  ;;  %2637 = vmatprep.mubr.msk.f32.mxu0 %vm2874_vm1, %v2873_v34 }
 0x509   : > { %v1334_v57 = vmul.f32 %v3159_v9, %v1326_v53  ;;  %v1319_v58 = vsub.f32 2.0, %v1311_v54  ;;  %2645 = vmatprep.subr.mxu0 %v2873_v34 }
 0x50a   : > { %v2796_v59 = vpop.eup %2795  ;;  %v1320_v60 = vsub.f32 2.0, %v1312_v56 }
 0x50b   : > { %v1327_v61 = vmul.f32 %v2792_v51, %v1319_v58  ;;  %v1313_v62 = vmul.f32 %v2796_v59, %v1295_v35  ;;  %2633 = vmatmul.mubr.msk.f32.vlgmr.msra.gmra.mxu1 %vm620_vm2, %v1334_v57 }
 0x50c   : > { %v1328_v63 = vmul.f32 %v2794_v52, %v1320_v60  ;;  %2641 = vmatpush3.msra.mxu1 %v1720_v43  ;;  %2642 = vmatprep.mubr.msk.f32.mxu1 %vm2874_vm1, %v2873_v34 }
 0x50d   : > { %v1335_v2 = vmul.f32 %v3165_v12, %v1327_v61  ;;  %v1321_v3 = vsub.f32 2.0, %v1313_v62  ;;  %2650 = vmatprep.subr.mxu1 %v2873_v34 }
 0x50e   : > { %v1336_v4 = vmul.f32 %v3163_v11, %v1328_v63 }
 0x50f   : > { %v1329_v5 = vmul.f32 %v2796_v59, %v1321_v3  ;;  %2638 = vmatmul.mubr.msk.f32.vlgmr.msra.gmra.mxu0 %vm620_vm2, %v1335_v2  ;;  %v2122_v2 = vld [vmem:[%s3391_s9 + $0x18] sm:$0xff]  ;;  %v2121_v3 = vld [vmem:[%s3391_s9 + $0x10] sm:$0xff] }
 0x510   : > { %2643 = vmatmul.mubr.msk.f32.vlgmr.msra.gmra.mxu1 %vm620_vm2, %v1336_v4  ;;  %2646 = vmatpush3.msra.mxu0 %v1796_v6  ;;  %v2120_v4 = vld [vmem:[%s3391_s9 + $0x8] sm:$0xff] }
 0x511   : > { %v1337_v7 = vmul.f32 %v3171_v15, %v1329_v5  ;;  %2647 = vmatprep.mubr.msk.f32.mxu0 %vm2874_vm1, %v2873_v34  ;;  %2652 = vmatprep.mubr.msk.f32.mxu1 %vm2874_vm1, %v2873_v34  ;;  %v2119_v5 = vld [vmem:[%s3391_s9] sm:$0xff] }
 0x513   : > { %2648 = vmatmul.mubr.msk.f32.vlgmr.msra.gmra.mxu0 %vm620_vm2, %v1337_v7 }
 0x52e   : > { %v1298_v8 = vpop.xlane.xlu1 %1297 }
 0x52f   : > { %2797 = vrcp.f32 %v1298_v8 }
 0x532   : > { %v1872_v9 = vpop.permute.xlu1 %1871 }
 0x533   : > { %2651 = vmatpush3.msra.mxu1 %v1872_v9 }
 0x534   : > { %2655 = vmatprep.subr.mxu1 %v1982_v19 }
 0x53c   : > { %v2798_v10 = vpop.eup %2797 }
 0x53d   : > { %v1314_v11 = vmul.f32 %v2798_v10, %v1298_v8 }
 0x53f   : > { %v1322_v12 = vsub.f32 2.0, %v1314_v11 }
 0x541   : > { %v1330_v13 = vmul.f32 %v2798_v10, %v1322_v12 }
 0x543   : > { %v1338_v14 = vmul.f32 %v3181_v23, %v1330_v13  ;;  %v2484_v13 = vld [vmem:[%s3389_s7] ss:$0 sm:$0xff] }
 0x545   : > { %2653 = vmatmul.mubr.msk.f32.vlgmr.msra.gmra.mxu1 %vm620_vm2, %v1338_v14 }
 0x546   : > { %2656 = vmatpush3.msra.mxu1 %v1982_v19 }
 0x547   : > { %2657 = vmatprep.subr.mxu1 %v1981_v20 }
 0x548   : > { %2658 = vmatpush3.msra.mxu1 %v1981_v20 }
 0x549   : > { %2659 = vmatprep.subr.mxu1 %v1980_v22 }
 0x54a   : > { %2660 = vmatpush3.msra.mxu1 %v1980_v22  ;;  %v2279_v22 = vld [vmem:[%s3393_s11 + $0x70] sm:$0xff] }
 0x54b   : > { %2661 = vmatprep.subr.mxu1 %v1979_v24 }
 0x54c   : > { %2662 = vmatpush3.msra.mxu1 %v1979_v24  ;;  %v2277_v24 = vld [vmem:[%s3393_s11 + $0x60] sm:$0xff] }
 0x54d   : > { %2666 = vmatprep.subr.mxu1 %v2122_v2 }
 0x56b   : > { %v1411_v15 = vpop.f32.mrf.mxu0 }
 0x56d   : > { %v2619_v16 = vpop.f32.mrf.mxu0 }
 0x5c3   : > { %v1487_v17 = vpop.f32.mrf.mxu1 }
 0x5c4   : > { %1948 = vrot.lane.b32.xlu0 %v1487_v17, %s3396_s20  ;;  %s2883_s20 = smov 24  }
 0x5c5   : > { %v2624_v34 = vpop.f32.mrf.mxu1 }
 0x5c7   : > { %v1563_v18 = vpop.f32.mrf.mxu0 }
 0x5c8   : > { %1952 = vrot.lane.b32.xlu1 %v1563_v18, %s2882_s21 }
 0x5c9   : > { %v2629_v21 = vpop.f32.mrf.mxu0 }
 0x5ca   : > { %v2280_v21 = vld [vmem:[%s3393_s11 + $0x78] sm:$0xff] }
 0x5cb   : > { %v1639_v23 = vpop.f32.mrf.mxu1  ;;  %2677 = vmatprep.subr.mxu0 %v2280_v21 }
 0x5cc   : > { %1956 = vrot.lane.b32.xlu1 %v1639_v23, %s2883_s20  ;;  %2678 = vmatpush3.msra.mxu0 %v2280_v21  ;;  %v2278_v23 = vld [vmem:[%s3393_s11 + $0x68] sm:$0xff] }
 0x5cd   : > { %v2634_v46 = vpop.f32.mrf.mxu1  ;;  %2679 = vmatprep.subr.mxu0 %v2279_v22 }
 0x5ce   : > { %2680 = vmatpush3.msra.mxu0 %v2279_v22  ;;  %v2276_v46 = vld [vmem:[%s3393_s11 + $0x58] sm:$0xff] }
 0x5cf   : > { %v1715_v25 = vpop.f32.mrf.mxu0  ;;  %2681 = vmatprep.subr.mxu0 %v2278_v23 }
 0x5d0   : > { %v1791_v39 = vpop.f32.mrf.mxu1  ;;  %2682 = vmatpush3.msra.mxu0 %v2278_v23 }
 0x5d1   : > { %1965 = vrot.lane.b32.xlu0 %v1791_v39, %s3408_s22  ;;  %v2639_v26 = vpop.f32.mrf.mxu0  ;;  %2683 = vmatprep.subr.mxu0 %v2277_v24  ;;  %v2274_v39 = vld [vmem:[%s3393_s11 + $0x48] sm:$0xff] }
 0x5d2   : > { %v2644_v44 = vpop.f32.mrf.mxu1  ;;  %2684 = vmatpush3.msra.mxu0 %v2277_v24  ;;  %v2273_v26 = vld [vmem:[%s3393_s11 + $0x40] sm:$0xff] }
 0x5d3   : > { %v1867_v27 = vpop.f32.mrf.mxu0  ;;  %2685 = vmatprep.subr.mxu0 %v2276_v46  ;;  %v2272_v44 = vld [vmem:[%s3393_s11 + $0x38] sm:$0xff] }
 0x5d4   : > { %2686 = vmatpush3.msra.mxu0 %v2276_v46 }
 0x5d5   : > { %1969 = vrot.lane.b32.xlu0 %v1867_v27, %s2882_s21  ;;  %v2649_v28 = vpop.f32.mrf.mxu0  ;;  %v2271_v27 = vld [vmem:[%s3393_s11 + $0x30] sm:$0xff]  ;;  %s432_s21 = sand.u32 1, %s2863_s26  }
 0x5d6   : > { %v2270_v28 = vld [vmem:[%s3393_s11 + $0x28] sm:$0xff]  ;;  %s2449_s23 = sshll.u32 %s432_s21, 4  ;;  %s3341_s29 = scalar_lea.sflag [#allocation3], %s432_s21 }
 0x5d7   : > { %s434_s16 = scalar_lea.vmem [#allocation2], %s2449_s23 }
 0x5d8   : > { %s2383_s0 = sshll.u32 %s434_s16, 4  ;;  %s3338_s0 = int_to_ptr.vmem [resolvable:$true] %s2383_s0 }
 0x5d9   : > { %s2811_s23 = scalar_lea.vmem %s3338_s0, 256  ;;  %p2818_p0 = scmp.lt.s32.totalorder %s3338_s0, %s2816_s30 }
 0x5da   : > { %p2812_p11 = scmp.ne.s32.totalorder %s3338_s0, %s2811_s23  ;;  %p2819_p1 = scmp.lt.s32.totalorder %s2817_s15, %s2811_s23 }
 0x5dc   : > { %p2813_p12 = pnand %p2812_p11, %p2994_p5  ;;  %p2820_p2 = por %p2819_p1, %p2818_p0 }
 0x5de   : > { %p2814_p13 = pneg %p2813_p12 }
 0x5e0   : > { %p2821_p3 = pnand %p2820_p2, %p2814_p13 }
 0x605   : > { %v1943_v29 = vpop.f32.mrf.mxu1 }
 0x606   : > { %1973 = vrot.lane.b32.xlu1 %v1943_v29, %s2883_s20  ;;  %v2269_v29 = vld [vmem:[%s3393_s11 + $0x20] sm:$0xff] }
 0x607   : > { %v2654_v30 = vpop.f32.mrf.mxu1 }
 0x608   : > { %v2268_v30 = vld [vmem:[%s3393_s11 + $0x18] sm:$0xff] }
 0x636   : > { %v1949_v31 = vpop.permute.xlu0 %1948 }
 0x637   : > { %v1959_v33 = vsel %vm620_vm2, %v1411_v15, %v1949_v31  ;;  %v2485_v15 = vld [vmem:[%s3390_s8] ss:$0 sm:$0xff]  ;;  %v2267_v31 = vld [vmem:[%s3393_s11 + $0x10] sm:$0xff] }
 0x63a   : > { %v1953_v32 = vpop.permute.xlu1 %1952 }
 0x63b   : > { %v1961_v35 = vsel %vm1960_vm4, %v1959_v33, %v1953_v32  ;;  %v2266_v32 = vld [vmem:[%s3393_s11 + $0x8] sm:$0xff]  ;;  %v2265_v33 = vld [vmem:[%s3393_s11] sm:$0xff] }
 0x63e   : > { %v1957_v36 = vpop.permute.xlu1 %1956 }
 0x63f   : > { %v1963_v37 = vsel %vm1962_vm5, %v1961_v35, %v1957_v36  ;;  %v2486_v35 = vld [vmem:[%s3392_s10] ss:$0 sm:$0xff] }
 0x640   : > { %2663 = vmatprep.mubr.msk.f32.mxu1 %vm446_vm0, %v1963_v37 }
 0x643   : > { %v1966_v40 = vpop.permute.xlu0 %1965 }
 0x644   : > { %v1976_v48 = vsel %vm620_vm2, %v1715_v25, %v1966_v40  ;;  %v2275_v25 = vld [vmem:[%s3393_s11 + $0x50] sm:$0xff] }
 0x645   : > { %2687 = vmatprep.subr.mxu0 %v2275_v25 }
 0x646   : > { %2688 = vmatpush3.msra.mxu0 %v2275_v25 }
 0x647   : > { %v1970_v45 = vpop.permute.xlu0 %1969  ;;  %2689 = vmatprep.subr.mxu0 %v2274_v39 }
 0x648   : > { %v1977_v47 = vsel %vm1960_vm4, %v1976_v48, %v1970_v45  ;;  %2690 = vmatpush3.msra.mxu0 %v2274_v39 }
 0x649   : > { %2691 = vmatprep.subr.mxu0 %v2273_v26 }
 0x64a   : > { %2692 = vmatpush3.msra.mxu0 %v2273_v26 }
 0x64b   : > { %2693 = vmatprep.subr.mxu0 %v2272_v44 }
 0x64c   : > { %2694 = vmatpush3.msra.mxu0 %v2272_v44 }
 0x64d   : > { %2695 = vmatprep.subr.mxu0 %v2271_v27 }
 0x64e   : > { %2696 = vmatpush3.msra.mxu0 %v2271_v27 }
 0x64f   : > { %2697 = vmatprep.subr.mxu0 %v2270_v28 }
 0x650   : > { %2698 = vmatpush3.msra.mxu0 %v2270_v28  ;;  %v2489_v28 = vld [vmem:[%s3394_s12] ss:$0 sm:$0xff] }
 0x651   : > { %2699 = vmatprep.subr.mxu0 %v2269_v29 }
 0x652   : > { %2700 = vmatpush3.msra.mxu0 %v2269_v29 }
 0x653   : > { %2701 = vmatprep.subr.mxu0 %v2268_v30 }
 0x654   : > { %2702 = vmatpush3.msra.mxu0 %v2268_v30 }
 0x655   : > { %2703 = vmatprep.subr.mxu0 %v2267_v31 }
 0x656   : > { %2704 = vmatpush3.msra.mxu0 %v2267_v31 }
 0x657   : > { %2705 = vmatprep.subr.mxu0 %v2266_v32 }
 0x658   : > { %2706 = vmatpush3.msra.mxu0 %v2266_v32 }
 0x659   : > { %2707 = vmatprep.subr.mxu0 %v2265_v33 }
 0x65a   : > { %2708 = vmatpush3.msra.mxu0 %v2265_v33 }
 0x678   : > { %v1974_v49 = vpop.permute.xlu1 %1973 }
 0x679   : > { %v1978_v50 = vsel %vm1962_vm5, %v1977_v47, %v1974_v49 }
 0x67a   : > { %2664 = vmatmul.mubr.msk.f32.vlgmr.msra.gmra.mxu1 %vm446_vm0, %v1978_v50 }
 0x67b   : > { %2667 = vmatpush3.msra.mxu1 %v2122_v2 }
 0x67c   : > { %2668 = vmatprep.subr.mxu1 %v2121_v3 }
 0x67d   : > { %2669 = vmatpush3.msra.mxu1 %v2121_v3 }
 0x67e   : > { %2670 = vmatprep.subr.mxu1 %v2120_v4 }
 0x67f   : > { %2671 = vmatpush3.msra.mxu1 %v2120_v4 }
 0x680   : > { %2672 = vmatprep.subr.mxu1 %v2119_v5 }
 0x681   : > { %2673 = vmatpush3.msra.mxu1 %v2119_v5 }
 0x73a   : > { %v2665_v41 = vpop.f32.mrf.mxu1 }
 0x73b   : > { %v2065_v38 = vadd.f32 %v2665_v41, %v3010_v1 }
 0x73c   : > { %v2055_v51 = vpop.f32.mrf.mxu1 }
 0x73d   : > { %v3241_v52 = vadd.f32 %v2483_v42, %v2065_v38  ;;  %v2064_v53 = vadd.f32 %v2055_v51, %v3008_v0 }
 0x73f   : > { %v3244_v54 = vadd.f32 %v2483_v42, %v2064_v53  ;;  %v2080_v55 = vsel %vm446_vm0, %v3241_v52, 0.0 }
 0x740   : > { %2081 = vadd.xlane.f32.xlu1 %v2080_v55 }
 0x741   : > { %v2077_v56 = vsel %vm446_vm0, %v3244_v54, 0.0 }
 0x742   : > { %2078 = vadd.xlane.f32.xlu0 %v2077_v56 }
 0x7c9   : > { %v2082_v57 = vpop.xlane.xlu1 %2081 }
 0x7ca   : > { %v2084_v58 = vmul.f32 0.03125, %v2082_v57 }
 0x7cb   : > { %v2079_v59 = vpop.xlane.xlu0 %2078 }
 0x7cc   : > { %v2083_v60 = vmul.f32 0.03125, %v2079_v59  ;;  %v2086_v1 = vsub.f32 %v3241_v52, %v2084_v58 }
 0x7ce   : > { %v2085_v61 = vsub.f32 %v3244_v54, %v2083_v60  ;;  %v2088_v43 = vmul.f32 %v2086_v1, %v2086_v1 }
 0x7d0   : > { %v2087_v62 = vmul.f32 %v2085_v61, %v2085_v61  ;;  %v2092_v63 = vsel %vm446_vm0, %v2088_v43, 0.0 }
 0x7d2   : > { %v2089_v0 = vsel %vm446_vm0, %v2087_v62, 0.0 }
 0x7d3   : > { %2090 = vadd.xlane.f32.xlu0 %v2089_v0 }
 0x7d7   : > { %2093 = vadd.xlane.f32.xlu0 %v2092_v63 }
 0x85c   : > { %v2091_v6 = vpop.xlane.xlu0 %2090 }
 0x85d   : > { %v2095_v7 = vmul.f32 0.03125, %v2091_v6 }
 0x85f   : > { %v2097_v8 = vadd.f32 1e-05, %v2095_v7 }
 0x860   : > { %v2094_v9 = vpop.xlane.xlu0 %2093 }
 0x861   : > { %2799 = vrsqrt.f32 %v2097_v8  ;;  %v2096_v10 = vmul.f32 0.03125, %v2094_v9 }
 0x863   : > { %v2098_v11 = vadd.f32 1e-05, %v2096_v10 }
 0x865   : > { %2801 = vrsqrt.f32 %v2098_v11 }
 0x86e   : > { %v2800_v12 = vpop.eup %2799 }
 0x86f   : > { %v2101_v14 = vmul.f32 %v2800_v12, %v2085_v61 }
 0x871   : > { %v2109_v16 = vmul.f32 %v2484_v13, %v2101_v14 }
 0x872   : > { %v2802_v17 = vpop.eup %2801 }
 0x873   : > { %v2102_v34 = vmul.f32 %v2802_v17, %v2086_v1  ;;  %v2117_v18 = vadd.f32 %v2485_v15, %v2109_v16 }
 0x875   : > { %v2110_v19 = vmul.f32 %v2484_v13, %v2102_v34  ;;  %2674 = vmatprep.mubr.msk.f32.mxu1 %vm446_vm0, %v2117_v18 }
 0x877   : > { %v2118_v20 = vadd.f32 %v2485_v15, %v2110_v19 }
 0x879   : > { %2675 = vmatmul.mubr.msk.f32.vlgmr.msra.gmra.mxu1 %vm446_vm0, %v2118_v20 }
 0x939   : > { %v2676_v36 = vpop.f32.mrf.mxu1 }
 0x93a   : > { %v2208_v37 = vadd.f32 %v2676_v36, %v2486_v35 }
 0x93b   : > { %v2202_v40 = vpop.f32.mrf.mxu1 }
 0x93c   : > { %v2214_v45 = vmul.f32 0.70710677, %v2208_v37  ;;  %v2203_v48 = vadd.f32 %v2486_v35, %v2202_v40  ;;  %v2212_v39 = vmul.f32 0.5, %v2208_v37 }
 0x93e   : > { %v2216_v47 = vand.u32 2147483647, %v2214_v45  ;;  %v2213_v49 = vmul.f32 0.70710677, %v2203_v48  ;;  %vm2256_vm6 = vcmp.ge.f32.partialorder %v2214_v45, 0.0  ;;  %v2211_v46 = vmul.f32 0.5, %v2203_v48 }
 0x940   : > { %v2218_v50 = vmul.f32 0.3275911, %v2216_v47  ;;  %v2215_v41 = vand.u32 2147483647, %v2213_v49  ;;  %v2244_v53 = vsub.f32 0.0, %v2216_v47  ;;  %vm2255_vm7 = vcmp.ge.f32.partialorder %v2213_v49, 0.0 }
 0x942   : > { %v2220_v42 = vadd.f32 1.0, %v2218_v50  ;;  %v2217_v38 = vmul.f32 0.3275911, %v2215_v41  ;;  %v2243_v55 = vsub.f32 0.0, %v2215_v41  ;;  %v2246_v56 = vmul.f32 %v2244_v53, %v2216_v47 }
 0x944   : > { %2803 = vrcp.f32 %v2220_v42  ;;  %v2219_v51 = vadd.f32 1.0, %v2217_v38  ;;  %v2245_v58 = vmul.f32 %v2243_v55, %v2215_v41  ;;  %v2249_v60 = vmul.f32 1.442695, %v2246_v56 }
 0x946   : > { %2805 = vrcp.f32 %v2219_v51  ;;  %v2247_v62 = vmul.f32 1.442695, %v2245_v58 }
 0x947   : > { %2807 = vpow2.f32 %v2249_v60 }
 0x948   : > { %2809 = vpow2.f32 %v2247_v62 }
 0x951   : > { %v2804_v57 = vpop.eup %2803 }
 0x952   : > { %v2226_v59 = vmul.f32 1.0614054, %v2804_v57 }
 0x953   : > { %v2806_v1 = vpop.eup %2805 }
 0x954   : > { %v2228_v61 = vadd.f32 -1.4531521, %v2226_v59  ;;  %v2225_v0 = vmul.f32 1.0614054, %v2806_v1  ;;  %v2808_v13 = vpop.eup %2807 }
 0x955   : > { %v2810_v17 = vpop.eup %2809 }
 0x956   : > { %v2230_v43 = vmul.f32 %v2804_v57, %v2228_v61  ;;  %v2227_v63 = vadd.f32 -1.4531521, %v2225_v0 }
 0x958   : > { %v2232_v2 = vadd.f32 1.4214138, %v2230_v43  ;;  %v2229_v3 = vmul.f32 %v2806_v1, %v2227_v63 }
 0x95a   : > { %v2234_v4 = vmul.f32 %v2804_v57, %v2232_v2  ;;  %v2231_v5 = vadd.f32 1.4214138, %v2229_v3 }
 0x95c   : > { %v2236_v6 = vadd.f32 -0.28449672, %v2234_v4  ;;  %v2233_v7 = vmul.f32 %v2806_v1, %v2231_v5 }
 0x95e   : > { %v2238_v8 = vmul.f32 %v2804_v57, %v2236_v6  ;;  %v2235_v9 = vadd.f32 -0.28449672, %v2233_v7 }
 0x960   : > { %v2240_v10 = vadd.f32 0.2548296, %v2238_v8  ;;  %v2237_v11 = vmul.f32 %v2806_v1, %v2235_v9 }
 0x962   : > { %v2242_v12 = vmul.f32 %v2804_v57, %v2240_v10  ;;  %v2239_v14 = vadd.f32 0.2548296, %v2237_v11 }
 0x964   : > { %v2252_v15 = vmul.f32 %v2808_v13, %v2242_v12  ;;  %v2241_v16 = vmul.f32 %v2806_v1, %v2239_v14 }
 0x966   : > { %v2254_v34 = vsub.f32 1.0, %v2252_v15  ;;  %v2251_v18 = vmul.f32 %v2810_v17, %v2241_v16 }
 0x968   : > { %v2258_v19 = vsub.f32 0.0, %v2254_v34  ;;  %v2253_v20 = vsub.f32 1.0, %v2251_v18 }
 0x96a   : > { %v2260_v21 = vsel %vm2256_vm6, %v2254_v34, %v2258_v19  ;;  %v2257_v22 = vsub.f32 0.0, %v2253_v20 }
 0x96b   : > { %v2262_v23 = vadd.f32 1.0, %v2260_v21 }
 0x96c   : > { %v2259_v24 = vsel %vm2255_vm7, %v2253_v20, %v2257_v22 }
 0x96d   : > { %v2261_v25 = vadd.f32 1.0, %v2259_v24  ;;  %v2264_v44 = vmul.f32 %v2262_v23, %v2212_v39 }
 0x96f   : > { %v2263_v26 = vmul.f32 %v2261_v25, %v2211_v46 }
 0x971   : > { %2709 = vmatprep.mubr.f32.mxu0 %v2263_v26 }
 0x972   : > { %2710 = vmatmul.mubr.f32.vlgmr.msra.gmra.mxu0 %v2264_v44 }
 0xa32   : > { %v2711_v27 = vpop.f32.mrf.mxu0 }
 0xa33   : > { %v2357_v29 = vadd.f32 %v2711_v27, %v3241_v52 }
 0xa34   : > { %v2347_v30 = vpop.f32.mrf.mxu0 }
 0xa35   : > { %v2366_v31 = vadd.f32 %v2489_v28, %v2357_v29  ;;  %v2356_v32 = vadd.f32 %v2347_v30, %v3244_v54 }
 0xa37   : > { %2368 = vst.msk [vmem:[%s434_s16 + $0x8] sm:$0xff] %vm446_vm0, %v2366_v31  ;;  %v2365_v33 = vadd.f32 %v2489_v28, %v2356_v32 }
 0xa39   : > { %2367 = vst.msk [vmem:[%s434_s16] sm:$0xff] %vm446_vm0, %v2365_v33 }
 0xa3a   : > { %2824 = shalt.err (!%p2821_p3)
}
 0xa3b   : > { %s2825_s21 = scalar_lea.hbm %s3335_s2, 256  ;;  %s2829_s20 = scalar_lea.hbm %s3395_s13, 512 }
 0xa3c   : > { %p2826_p4 = scmp.ne.s32.totalorder %s3335_s2, %s2825_s21  ;;  %p2830_p9 = scmp.lt.s32.totalorder %s3335_s2, %s3395_s13 }
 0xa3d   : > { %p2831_p10 = scmp.lt.s32.totalorder %s2829_s20, %s2825_s21 }
 0xa3e   : > { %p2827_p7 = pnand %p2826_p4, %p2994_p5 }
 0xa3f   : > { %p2832_p11 = por %p2831_p10, %p2830_p9 }
 0xa40   : > { %p2828_p8 = pneg %p2827_p7 }
 0xa42   : > { %p2833_p12 = pnand %p2832_p11, %p2828_p8 }
 0xa44   : > { %2836 = shalt.err (!%p2833_p12)
}
 0xa45   : > { %s2885_s23 = smov 128  }
 0xa46   : > { %2712 = dma.vmem_to_hbm [thread:$0]  (%p2994_p5), %s3338_s0, 256, %s3335_s2, %s3341_s29, %s2885_s23, %s2885_s23, %s3408_s22  }
 0xa47 PF: > { %p2718_p13 = scmp.ge.s32.totalorder %s2871_s28, 2  ;;  %s2398_s30 = sand.u32 1, %s2859_s25  }
 0xa48   : > { %s2399_s3 = scalar_lea.sflag [#allocation3], %s2398_s30 }
 0xa49   : > { %p2715_p0 = pnand %p2718_p13, %p2998_p6 }
 0xa4b   : > { %p2716_p1 = pneg %p2715_p0 }
 0xa4d   : > { %2854 = dma.done.wait (%p2716_p1), %s2399_s3, 256  }
 0xa4e   : > { %2856 = vsyncadd (%p2716_p1), %s2399_s3, 4294967040  ;;  %p23_p2 = scmp.ge.s32.totalorder %s2981_s14, 4   ;;  %s3409_s25 = smov %s2863_s26 }
 0xa4f   : > { %s3410_s26 = smov %s2867_s27  ;;  %s3411_s27 = smov %s2992_s17 }
 0xa50   : > { %s3412_s28 = smov %s2981_s14  ;;  %25 = sbr.rel (!%p23_p2) target bundleno = 8 (0x8), region = 107 }
 0xa55   :  { %2404 = vsyncpa [#allocation3], 1 }
 0xa56   :  { %2406 = vsyncpa [#allocation3 + $0x1], 1 }

</bundles_post_ra>
